<compile_context>
chip_gen: v6e
topology: v6e:2x2x1
jax: 0.10.0
libtpu: 0.0.40
codegen_flags: <defaults>
</compile_context>

<pallas_src>
from functools import partial

import jax
import jax.numpy as jnp
from jax.experimental import pallas as pl
from jax.experimental.pallas import tpu as pltpu


def _tree_sum(terms):
    """Balanced-tree add: breaks the serial accumulate dependency chain."""
    terms = list(terms)
    while len(terms) > 1:
        nxt = [terms[i] + terms[i + 1] for i in range(0, len(terms) - 1, 2)]
        if len(terms) % 2:
            nxt.append(terms[-1])
        terms = nxt
    return terms[0]


def sepconv_block_kernel(x_ref, dw_ref, pw_ref, shift_ref, out_ref,
                         xpad_ref, xcol_ref, *, k, s, p, H, W, Ho, Wo, TH):
    # x_ref:     (1, Cin, H, W)        VMEM, one image (block reused across h axis)
    # dw_ref:    (Cin, k*k)            SMEM, depthwise taps (scalars)
    # pw_ref:    (Cout, Cin)           SMEM, pointwise weights pre-scaled by BN scale
    # shift_ref: (Cout,)               SMEM, folded BN shift
    # out_ref:   (1, Cout, TH, Wo)     VMEM, one block of output rows
    # xpad_ref:  (Cin, H+2p, W+2p)     VMEM scratch: ReLU'd, zero-padded image
    # xcol_ref:  (Cin, k, H+2p, Wo)    VMEM scratch: per-kx column-shifted views
    cin = x_ref.shape[1]
    cout = out_ref.shape[1]
    h = pl.program_id(1)

    # Build the padded + ReLU'd image and its column-shifted views once per
    # image (first row-block only).  The h grid axis is "arbitrary"
    # (sequential), so h == 0 always runs before the other row-blocks of the
    # same image on the same core.
    @pl.when(h == 0)
    def _():
        if p > 0:
            xpad_ref[...] = jnp.zeros_like(xpad_ref)
        xpad_ref[:, p:p + H, p:p + W] = jnp.maximum(x_ref[0], 0.0)
        # Hoist the kx lane shifts (and, for s > 1, the column stride) out of
        # the per-row-block tap loop: done k times per image instead of k*k
        # times per row-block.
        for kx in range(k):
            if s == 1:
                xcol_ref[:, kx] = xpad_ref[:, :, kx:kx + Wo]
            else:
                xcol_ref[:, kx] = xpad_ref[:, :, pl.ds(kx, Wo, stride=s)]

    # First padded input row feeding this block of output rows.
    row_base = pl.multiple_of(h * (TH * s), TH * s)

    # ---- Depthwise conv: k*k scalar-weighted, lane-aligned shifted slices (VPU).
    dw_out = []
    for ci in range(cin):
        taps = []
        for ky in range(k):
            if s == 1:
                rows = pl.ds(row_base + ky, TH)
            else:
                rows = pl.ds(row_base + ky, TH, stride=s)
            for kx in range(k):
                patch = xcol_ref[ci, kx, rows, :]                     # (TH, Wo)
                taps.append(patch * dw_ref[ci, ky * k + kx])
        dw_out.append(_tree_sum(taps).astype(jnp.float32))

    # ---- Pointwise 1x1 conv (BN scale already folded in) + BN shift: VPU FMA.
    for co in range(cout):
        terms = [dw_out[ci] * pw_ref[co, ci] for ci in range(cin)]
        y = _tree_sum(terms) + shift_ref[co]
        out_ref[0, co] = y.astype(out_ref.dtype)


def _pick_block_h(ho):
    """Largest row-tile from a friendly list that divides Ho; else whole image."""
    for cand in (128, 64, 32, 16, 8):
        if ho % cand == 0:
            return cand
    return ho


def sep_conv_block(x_nchw, dw_w, pw_w, gamma, beta, running_mean, running_var,
                   *, k, s, p, eps=1e-5, block_h=None):
    """x_nchw: (N, Cin, H, W); dw_w: (Cin, 1, k, k); pw_w: (Cout, Cin, 1, 1)."""
    N, Cin, H, W = x_nchw.shape
    Cout = pw_w.shape[0]
    Ho = (H + 2 * p - k) // s + 1
    Wo = (W + 2 * p - k) // s + 1
    Hp, Wp = H + 2 * p, W + 2 * p

    if block_h is None or Ho % block_h != 0:
        block_h = _pick_block_h(Ho)
    GH = Ho // block_h

    # Tiny constant tensors -> SMEM.  Fold BN scale into the pointwise weights.
    dw_flat = dw_w[:, 0, :, :].reshape(Cin, k * k).astype(jnp.float32)       # (Cin, k*k)
    inv_std = jax.lax.rsqrt(running_var.astype(jnp.float32) + eps)
    scale = gamma.astype(jnp.float32) * inv_std                              # (Cout,)
    pw_scaled = pw_w[:, :, 0, 0].astype(jnp.float32) * scale[:, None]        # (Cout, Cin)
    shift = beta.astype(jnp.float32) - running_mean.astype(jnp.float32) * scale

    kernel = partial(sepconv_block_kernel, k=k, s=s, p=p,
                     H=H, W=W, Ho=Ho, Wo=Wo, TH=block_h)

    out = pl.pallas_call(
        kernel,
        out_shape=jax.ShapeDtypeStruct((N, Cout, Ho, Wo), x_nchw.dtype),
        grid=(N, GH),
        in_specs=[
            # Full image per n; block index ignores h, so it is not re-DMA'd
            # while iterating over row-blocks of the same image.
            pl.BlockSpec((1, Cin, H, W), lambda n, h: (n, 0, 0, 0)),
            pl.BlockSpec(memory_space=pltpu.MemorySpace.SMEM),   # depthwise taps
            pl.BlockSpec(memory_space=pltpu.MemorySpace.SMEM),   # pointwise * BN scale
            pl.BlockSpec(memory_space=pltpu.MemorySpace.SMEM),   # BN shift
        ],
        out_specs=pl.BlockSpec((1, Cout, block_h, Wo), lambda n, h: (n, 0, h, 0)),
        scratch_shapes=[
            pltpu.VMEM((Cin, Hp, Wp), x_nchw.dtype),       # ReLU'd padded image
            pltpu.VMEM((Cin, k, Hp, Wo), x_nchw.dtype),    # column-shifted views
        ],
        compiler_params=pltpu.CompilerParams(
            dimension_semantics=("parallel", "arbitrary")),
    )(x_nchw, dw_flat, pw_scaled, shift)

    return out


def reference(x, dw_w, pw_w, gamma, beta, rm, rv, *, k, s, p, eps=1e-5):
    """Pure-JAX reference (lax conv) matching the PyTorch module in eval mode."""
    xr = jnp.maximum(x, 0.0)
    y = jax.lax.conv_general_dilated(
        xr, dw_w, window_strides=(s, s), padding=[(p, p), (p, p)],
        dimension_numbers=("NCHW", "OIHW", "NCHW"),
        feature_group_count=x.shape[1])
    y = jax.lax.conv_general_dilated(
        y, pw_w, window_strides=(1, 1), padding="VALID",
        dimension_numbers=("NCHW", "OIHW", "NCHW"))
    scale = gamma / jnp.sqrt(rv + eps)
    shift = beta - rm * scale
    return y * scale[None, :, None, None] + shift[None, :, None, None]


if __name__ == "__main__":
    key = jax.random.PRNGKey(0)
    kx_key, kp_key = jax.random.split(key)

    N, Cin, Cout, H, W = 2, 4, 8, 16, 16
    x = jax.random.normal(kx_key, (N, Cin, H, W), dtype=jnp.float32)

    def make_params(subkey, cin, cout, k):
        kdw, kpw, kg, kb, km, kv = jax.random.split(subkey, 6)
        dw_w = jax.random.normal(kdw, (cin, 1, k, k), dtype=jnp.float32) * 0.2
        pw_w = jax.random.normal(kpw, (cout, cin, 1, 1), dtype=jnp.float32) * 0.2
        gamma = 1.0 + 0.1 * jax.random.normal(kg, (cout,), dtype=jnp.float32)
        beta = 0.1 * jax.random.normal(kb, (cout,), dtype=jnp.float32)
        rm = 0.05 * jax.random.normal(km, (cout,), dtype=jnp.float32)
        rv = 1.0 + 0.1 * jax.nn.softplus(
            jax.random.normal(kv, (cout,), dtype=jnp.float32))
        return dw_w, pw_w, gamma, beta, rm, rv

    # (k, s, p, block_h): Xception SepConvBlock config (3,1,1) with two row
    # tilings, the module-default config (1,1,0), and an un-padded 3x3 (3,1,0).
    configs = [(3, 1, 1, None), (3, 1, 1, 8), (1, 1, 0, None), (3, 1, 0, None)]
    for idx, (k, s, p, bh) in enumerate(configs):
        params = make_params(jax.random.fold_in(kp_key, idx), Cin, Cout, k)
        ref = reference(x, *params, k=k, s=s, p=p)
        out = sep_conv_block(x, *params, k=k, s=s, p=p, block_h=bh)
        out = jax.block_until_ready(out)
        assert out.shape == ref.shape, (out.shape, ref.shape)
        err = float(jnp.abs(out - ref).max())
        assert jnp.allclose(out, ref, atol=1e-4, rtol=1e-4), (k, s, p, bh, err)

    print("KERNEL_OK")
</pallas_src>

<mosaic_0001>
module attributes {stable_mosaic.version = 11 : i64} {
  func.func @sepconv_block_kernel(%arg0: i32, %arg1: i32, %arg2: memref<1x4x16x16xf32, #tpu.memory_space<vmem>>, %arg3: memref<4x9xf32, #tpu.memory_space<smem>>, %arg4: memref<8x4xf32, #tpu.memory_space<smem>>, %arg5: memref<8xf32, #tpu.memory_space<smem>>, %arg6: memref<1x8x16x16xf32, #tpu.memory_space<vmem>>, %arg7: memref<4x18x18xf32, #tpu.memory_space<vmem>>, %arg8: memref<4x3x18x16xf32, #tpu.memory_space<vmem>>) attributes {dimension_semantics = [#tpu.dimension_semantics<parallel>, #tpu.dimension_semantics<arbitrary>], iteration_bounds = array<i64: 2, 1>, scalar_prefetch = 0 : i64, scratch_operands = 2 : i64, tpu.core_type = #tpu.core_type<tc>, window_params = [{transform_indices = @transform_0, window_bounds = array<i64: 1, 4, 16, 16>}, {transform_indices = @transform_1, window_bounds = array<i64: 4, 9>}, {transform_indices = @transform_2, window_bounds = array<i64: 8, 4>}, {transform_indices = @transform_3, window_bounds = array<i64: 8>}, {transform_indices = @transform_4, window_bounds = array<i64: 1, 8, 16, 16>}]} {
    %c0_i32 = arith.constant 0 : i32
    %0 = arith.cmpi eq, %arg1, %c0_i32 : i32
    %1 = arith.extui %0 : i1 to i32
    %c0_i32_0 = arith.constant 0 : i32
    %2 = arith.cmpi ne, %1, %c0_i32_0 : i32
    scf.if %2 {
      %cst = arith.constant 0.000000e+00 : f32
      %433 = vector.broadcast %cst : f32 to vector<4x18x18xf32>
      %c0_286 = arith.constant 0 : index
      %c0_287 = arith.constant 0 : index
      %c0_288 = arith.constant 0 : index
      %434 = vector.load %arg7[%c0_286, %c0_287, %c0_288] : memref<4x18x18xf32, #tpu.memory_space<vmem>>, vector<4x18x18xf32>
      tpu.vector_store %arg7[%c0_286, %c0_287, %c0_288], %433 {strides = array<i32>} : memref<4x18x18xf32, #tpu.memory_space<vmem>>, vector<4x18x18xf32>,
      %c0_289 = arith.constant 0 : index
      %c0_290 = arith.constant 0 : index
      %c0_291 = arith.constant 0 : index
      %c0_292 = arith.constant 0 : index
      %435 = vector.load %arg2[%c0_289, %c0_290, %c0_291, %c0_292] : memref<1x4x16x16xf32, #tpu.memory_space<vmem>>, vector<1x4x16x16xf32>
      %436 = vector.shape_cast %435 : vector<1x4x16x16xf32> to vector<4x16x16xf32>
      %cst_293 = arith.constant 0.000000e+00 : f32
      %437 = vector.broadcast %cst_293 : f32 to vector<4x16x16xf32>
      %438 = arith.maximumf %436, %437 : vector<4x16x16xf32>
      %c0_294 = arith.constant 0 : index
      %c1_295 = arith.constant 1 : index
      %c1_296 = arith.constant 1 : index
      %439 = vector.load %arg7[%c0_294, %c1_295, %c1_296] : memref<4x18x18xf32, #tpu.memory_space<vmem>>, vector<4x16x16xf32>
      tpu.vector_store %arg7[%c0_294, %c1_295, %c1_296], %438 {strides = array<i32>} : memref<4x18x18xf32, #tpu.memory_space<vmem>>, vector<4x16x16xf32>,
      %c0_297 = arith.constant 0 : index
      %c0_298 = arith.constant 0 : index
      %c0_299 = arith.constant 0 : index
      %440 = vector.load %arg7[%c0_297, %c0_298, %c0_299] : memref<4x18x18xf32, #tpu.memory_space<vmem>>, vector<4x18x16xf32>
      %c0_300 = arith.constant 0 : index
      %c0_301 = arith.constant 0 : index
      %c0_302 = arith.constant 0 : index
      %c0_303 = arith.constant 0 : index
      %441 = vector.load %arg8[%c0_300, %c0_301, %c0_302, %c0_303] : memref<4x3x18x16xf32, #tpu.memory_space<vmem>>, vector<4x1x18x16xf32>
      %442 = vector.shape_cast %441 : vector<4x1x18x16xf32> to vector<4x18x16xf32>
      %443 = vector.shape_cast %440 : vector<4x18x16xf32> to vector<4x1x18x16xf32>
      tpu.vector_store %arg8[%c0_300, %c0_301, %c0_302, %c0_303], %443 {strides = array<i32>} : memref<4x3x18x16xf32, #tpu.memory_space<vmem>>, vector<4x1x18x16xf32>,
      %c0_304 = arith.constant 0 : index
      %c0_305 = arith.constant 0 : index
      %c1_306 = arith.constant 1 : index
      %444 = vector.load %arg7[%c0_304, %c0_305, %c1_306] : memref<4x18x18xf32, #tpu.memory_space<vmem>>, vector<4x18x16xf32>
      %c0_307 = arith.constant 0 : index
      %c1_308 = arith.constant 1 : index
      %c0_309 = arith.constant 0 : index
      %c0_310 = arith.constant 0 : index
      %445 = vector.load %arg8[%c0_307, %c1_308, %c0_309, %c0_310] : memref<4x3x18x16xf32, #tpu.memory_space<vmem>>, vector<4x1x18x16xf32>
      %446 = vector.shape_cast %445 : vector<4x1x18x16xf32> to vector<4x18x16xf32>
      %447 = vector.shape_cast %444 : vector<4x18x16xf32> to vector<4x1x18x16xf32>
      tpu.vector_store %arg8[%c0_307, %c1_308, %c0_309, %c0_310], %447 {strides = array<i32>} : memref<4x3x18x16xf32, #tpu.memory_space<vmem>>, vector<4x1x18x16xf32>,
      %c0_311 = arith.constant 0 : index
      %c0_312 = arith.constant 0 : index
      %c2_313 = arith.constant 2 : index
      %448 = vector.load %arg7[%c0_311, %c0_312, %c2_313] : memref<4x18x18xf32, #tpu.memory_space<vmem>>, vector<4x18x16xf32>
      %c0_314 = arith.constant 0 : index
      %c2_315 = arith.constant 2 : index
      %c0_316 = arith.constant 0 : index
      %c0_317 = arith.constant 0 : index
      %449 = vector.load %arg8[%c0_314, %c2_315, %c0_316, %c0_317] : memref<4x3x18x16xf32, #tpu.memory_space<vmem>>, vector<4x1x18x16xf32>
      %450 = vector.shape_cast %449 : vector<4x1x18x16xf32> to vector<4x18x16xf32>
      %451 = vector.shape_cast %448 : vector<4x18x16xf32> to vector<4x1x18x16xf32>
      tpu.vector_store %arg8[%c0_314, %c2_315, %c0_316, %c0_317], %451 {strides = array<i32>} : memref<4x3x18x16xf32, #tpu.memory_space<vmem>>, vector<4x1x18x16xf32>,
    } else {
    }
    %c16_i32 = arith.constant 16 : i32
    %3 = arith.muli %arg1, %c16_i32 : i32
    %4 = tpu.assume_multiple %3, 16 : i32
    %c0_i32_1 = arith.constant 0 : i32
    %5 = arith.addi %4, %c0_i32_1 : i32
    %c0 = arith.constant 0 : index
    %c0_2 = arith.constant 0 : index
    %6 = arith.index_cast %5 : i32 to index
    %c0_3 = arith.constant 0 : index
    %7 = vector.load %arg8[%c0, %c0_2, %6, %c0_3] : memref<4x3x18x16xf32, #tpu.memory_space<vmem>>, vector<1x1x16x16xf32>
    %8 = vector.shape_cast %7 : vector<1x1x16x16xf32> to vector<16x16xf32>
    %c0_4 = arith.constant 0 : index
    %c0_5 = arith.constant 0 : index
    %9 = memref.load %arg3[%c0_4, %c0_5] : memref<4x9xf32, #tpu.memory_space<smem>>
    %10 = vector.broadcast %9 : f32 to vector<16x16xf32>
    %11 = arith.mulf %8, %10 : vector<16x16xf32>
    %c0_6 = arith.constant 0 : index
    %c1 = arith.constant 1 : index
    %12 = arith.index_cast %5 : i32 to index
    %c0_7 = arith.constant 0 : index
    %13 = vector.load %arg8[%c0_6, %c1, %12, %c0_7] : memref<4x3x18x16xf32, #tpu.memory_space<vmem>>, vector<1x1x16x16xf32>
    %14 = vector.shape_cast %13 : vector<1x1x16x16xf32> to vector<16x16xf32>
    %c0_8 = arith.constant 0 : index
    %c1_9 = arith.constant 1 : index
    %15 = memref.load %arg3[%c0_8, %c1_9] : memref<4x9xf32, #tpu.memory_space<smem>>
    %16 = vector.broadcast %15 : f32 to vector<16x16xf32>
    %17 = arith.mulf %14, %16 : vector<16x16xf32>
    %c0_10 = arith.constant 0 : index
    %c2 = arith.constant 2 : index
    %18 = arith.index_cast %5 : i32 to index
    %c0_11 = arith.constant 0 : index
    %19 = vector.load %arg8[%c0_10, %c2, %18, %c0_11] : memref<4x3x18x16xf32, #tpu.memory_space<vmem>>, vector<1x1x16x16xf32>
    %20 = vector.shape_cast %19 : vector<1x1x16x16xf32> to vector<16x16xf32>
    %c0_12 = arith.constant 0 : index
    %c2_13 = arith.constant 2 : index
    %21 = memref.load %arg3[%c0_12, %c2_13] : memref<4x9xf32, #tpu.memory_space<smem>>
    %22 = vector.broadcast %21 : f32 to vector<16x16xf32>
    %23 = arith.mulf %20, %22 : vector<16x16xf32>
    %c1_i32 = arith.constant 1 : i32
    %24 = arith.addi %4, %c1_i32 : i32
    %c0_14 = arith.constant 0 : index
    %c0_15 = arith.constant 0 : index
    %25 = arith.index_cast %24 : i32 to index
    %c0_16 = arith.constant 0 : index
    %26 = vector.load %arg8[%c0_14, %c0_15, %25, %c0_16] : memref<4x3x18x16xf32, #tpu.memory_space<vmem>>, vector<1x1x16x16xf32>
    %27 = vector.shape_cast %26 : vector<1x1x16x16xf32> to vector<16x16xf32>
    %c0_17 = arith.constant 0 : index
    %c3 = arith.constant 3 : index
    %28 = memref.load %arg3[%c0_17, %c3] : memref<4x9xf32, #tpu.memory_space<smem>>
    %29 = vector.broadcast %28 : f32 to vector<16x16xf32>
    %30 = arith.mulf %27, %29 : vector<16x16xf32>
    %c0_18 = arith.constant 0 : index
    %c1_19 = arith.constant 1 : index
    %31 = arith.index_cast %24 : i32 to index
    %c0_20 = arith.constant 0 : index
    %32 = vector.load %arg8[%c0_18, %c1_19, %31, %c0_20] : memref<4x3x18x16xf32, #tpu.memory_space<vmem>>, vector<1x1x16x16xf32>
    %33 = vector.shape_cast %32 : vector<1x1x16x16xf32> to vector<16x16xf32>
    %c0_21 = arith.constant 0 : index
    %c4 = arith.constant 4 : index
    %34 = memref.load %arg3[%c0_21, %c4] : memref<4x9xf32, #tpu.memory_space<smem>>
    %35 = vector.broadcast %34 : f32 to vector<16x16xf32>
    %36 = arith.mulf %33, %35 : vector<16x16xf32>
    %c0_22 = arith.constant 0 : index
    %c2_23 = arith.constant 2 : index
    %37 = arith.index_cast %24 : i32 to index
    %c0_24 = arith.constant 0 : index
    %38 = vector.load %arg8[%c0_22, %c2_23, %37, %c0_24] : memref<4x3x18x16xf32, #tpu.memory_space<vmem>>, vector<1x1x16x16xf32>
    %39 = vector.shape_cast %38 : vector<1x1x16x16xf32> to vector<16x16xf32>
    %c0_25 = arith.constant 0 : index
    %c5 = arith.constant 5 : index
    %40 = memref.load %arg3[%c0_25, %c5] : memref<4x9xf32, #tpu.memory_space<smem>>
    %41 = vector.broadcast %40 : f32 to vector<16x16xf32>
    %42 = arith.mulf %39, %41 : vector<16x16xf32>
    %c2_i32 = arith.constant 2 : i32
    %43 = arith.addi %4, %c2_i32 : i32
    %c0_26 = arith.constant 0 : index
    %c0_27 = arith.constant 0 : index
    %44 = arith.index_cast %43 : i32 to index
    %c0_28 = arith.constant 0 : index
    %45 = vector.load %arg8[%c0_26, %c0_27, %44, %c0_28] : memref<4x3x18x16xf32, #tpu.memory_space<vmem>>, vector<1x1x16x16xf32>
    %46 = vector.shape_cast %45 : vector<1x1x16x16xf32> to vector<16x16xf32>
    %c0_29 = arith.constant 0 : index
    %c6 = arith.constant 6 : index
    %47 = memref.load %arg3[%c0_29, %c6] : memref<4x9xf32, #tpu.memory_space<smem>>
    %48 = vector.broadcast %47 : f32 to vector<16x16xf32>
    %49 = arith.mulf %46, %48 : vector<16x16xf32>
    %c0_30 = arith.constant 0 : index
    %c1_31 = arith.constant 1 : index
    %50 = arith.index_cast %43 : i32 to index
    %c0_32 = arith.constant 0 : index
    %51 = vector.load %arg8[%c0_30, %c1_31, %50, %c0_32] : memref<4x3x18x16xf32, #tpu.memory_space<vmem>>, vector<1x1x16x16xf32>
    %52 = vector.shape_cast %51 : vector<1x1x16x16xf32> to vector<16x16xf32>
    %c0_33 = arith.constant 0 : index
    %c7 = arith.constant 7 : index
    %53 = memref.load %arg3[%c0_33, %c7] : memref<4x9xf32, #tpu.memory_space<smem>>
    %54 = vector.broadcast %53 : f32 to vector<16x16xf32>
    %55 = arith.mulf %52, %54 : vector<16x16xf32>
    %c0_34 = arith.constant 0 : index
    %c2_35 = arith.constant 2 : index
    %56 = arith.index_cast %43 : i32 to index
    %c0_36 = arith.constant 0 : index
    %57 = vector.load %arg8[%c0_34, %c2_35, %56, %c0_36] : memref<4x3x18x16xf32, #tpu.memory_space<vmem>>, vector<1x1x16x16xf32>
    %58 = vector.shape_cast %57 : vector<1x1x16x16xf32> to vector<16x16xf32>
    %c0_37 = arith.constant 0 : index
    %c8 = arith.constant 8 : index
    %59 = memref.load %arg3[%c0_37, %c8] : memref<4x9xf32, #tpu.memory_space<smem>>
    %60 = vector.broadcast %59 : f32 to vector<16x16xf32>
    %61 = arith.mulf %58, %60 : vector<16x16xf32>
    %62 = arith.addf %11, %17 : vector<16x16xf32>
    %63 = arith.addf %23, %30 : vector<16x16xf32>
    %64 = arith.addf %36, %42 : vector<16x16xf32>
    %65 = arith.addf %49, %55 : vector<16x16xf32>
    %66 = arith.addf %62, %63 : vector<16x16xf32>
    %67 = arith.addf %64, %65 : vector<16x16xf32>
    %68 = arith.addf %66, %67 : vector<16x16xf32>
    %69 = arith.addf %68, %61 : vector<16x16xf32>
    %c0_i32_38 = arith.constant 0 : i32
    %70 = arith.addi %4, %c0_i32_38 : i32
    %c1_39 = arith.constant 1 : index
    %c0_40 = arith.constant 0 : index
    %71 = arith.index_cast %70 : i32 to index
    %c0_41 = arith.constant 0 : index
    %72 = vector.load %arg8[%c1_39, %c0_40, %71, %c0_41] : memref<4x3x18x16xf32, #tpu.memory_space<vmem>>, vector<1x1x16x16xf32>
    %73 = vector.shape_cast %72 : vector<1x1x16x16xf32> to vector<16x16xf32>
    %c1_42 = arith.constant 1 : index
    %c0_43 = arith.constant 0 : index
    %74 = memref.load %arg3[%c1_42, %c0_43] : memref<4x9xf32, #tpu.memory_space<smem>>
    %75 = vector.broadcast %74 : f32 to vector<16x16xf32>
    %76 = arith.mulf %73, %75 : vector<16x16xf32>
    %c1_44 = arith.constant 1 : index
    %c1_45 = arith.constant 1 : index
    %77 = arith.index_cast %70 : i32 to index
    %c0_46 = arith.constant 0 : index
    %78 = vector.load %arg8[%c1_44, %c1_45, %77, %c0_46] : memref<4x3x18x16xf32, #tpu.memory_space<vmem>>, vector<1x1x16x16xf32>
    %79 = vector.shape_cast %78 : vector<1x1x16x16xf32> to vector<16x16xf32>
    %c1_47 = arith.constant 1 : index
    %c1_48 = arith.constant 1 : index
    %80 = memref.load %arg3[%c1_47, %c1_48] : memref<4x9xf32, #tpu.memory_space<smem>>
    %81 = vector.broadcast %80 : f32 to vector<16x16xf32>
    %82 = arith.mulf %79, %81 : vector<16x16xf32>
    %c1_49 = arith.constant 1 : index
    %c2_50 = arith.constant 2 : index
    %83 = arith.index_cast %70 : i32 to index
    %c0_51 = arith.constant 0 : index
    %84 = vector.load %arg8[%c1_49, %c2_50, %83, %c0_51] : memref<4x3x18x16xf32, #tpu.memory_space<vmem>>, vector<1x1x16x16xf32>
    %85 = vector.shape_cast %84 : vector<1x1x16x16xf32> to vector<16x16xf32>
    %c1_52 = arith.constant 1 : index
    %c2_53 = arith.constant 2 : index
    %86 = memref.load %arg3[%c1_52, %c2_53] : memref<4x9xf32, #tpu.memory_space<smem>>
    %87 = vector.broadcast %86 : f32 to vector<16x16xf32>
    %88 = arith.mulf %85, %87 : vector<16x16xf32>
    %c1_i32_54 = arith.constant 1 : i32
    %89 = arith.addi %4, %c1_i32_54 : i32
    %c1_55 = arith.constant 1 : index
    %c0_56 = arith.constant 0 : index
    %90 = arith.index_cast %89 : i32 to index
    %c0_57 = arith.constant 0 : index
    %91 = vector.load %arg8[%c1_55, %c0_56, %90, %c0_57] : memref<4x3x18x16xf32, #tpu.memory_space<vmem>>, vector<1x1x16x16xf32>
    %92 = vector.shape_cast %91 : vector<1x1x16x16xf32> to vector<16x16xf32>
    %c1_58 = arith.constant 1 : index
    %c3_59 = arith.constant 3 : index
    %93 = memref.load %arg3[%c1_58, %c3_59] : memref<4x9xf32, #tpu.memory_space<smem>>
    %94 = vector.broadcast %93 : f32 to vector<16x16xf32>
    %95 = arith.mulf %92, %94 : vector<16x16xf32>
    %c1_60 = arith.constant 1 : index
    %c1_61 = arith.constant 1 : index
    %96 = arith.index_cast %89 : i32 to index
    %c0_62 = arith.constant 0 : index
    %97 = vector.load %arg8[%c1_60, %c1_61, %96, %c0_62] : memref<4x3x18x16xf32, #tpu.memory_space<vmem>>, vector<1x1x16x16xf32>
    %98 = vector.shape_cast %97 : vector<1x1x16x16xf32> to vector<16x16xf32>
    %c1_63 = arith.constant 1 : index
    %c4_64 = arith.constant 4 : index
    %99 = memref.load %arg3[%c1_63, %c4_64] : memref<4x9xf32, #tpu.memory_space<smem>>
    %100 = vector.broadcast %99 : f32 to vector<16x16xf32>
    %101 = arith.mulf %98, %100 : vector<16x16xf32>
    %c1_65 = arith.constant 1 : index
    %c2_66 = arith.constant 2 : index
    %102 = arith.index_cast %89 : i32 to index
    %c0_67 = arith.constant 0 : index
    %103 = vector.load %arg8[%c1_65, %c2_66, %102, %c0_67] : memref<4x3x18x16xf32, #tpu.memory_space<vmem>>, vector<1x1x16x16xf32>
    %104 = vector.shape_cast %103 : vector<1x1x16x16xf32> to vector<16x16xf32>
    %c1_68 = arith.constant 1 : index
    %c5_69 = arith.constant 5 : index
    %105 = memref.load %arg3[%c1_68, %c5_69] : memref<4x9xf32, #tpu.memory_space<smem>>
    %106 = vector.broadcast %105 : f32 to vector<16x16xf32>
    %107 = arith.mulf %104, %106 : vector<16x16xf32>
    %c2_i32_70 = arith.constant 2 : i32
    %108 = arith.addi %4, %c2_i32_70 : i32
    %c1_71 = arith.constant 1 : index
    %c0_72 = arith.constant 0 : index
    %109 = arith.index_cast %108 : i32 to index
    %c0_73 = arith.constant 0 : index
    %110 = vector.load %arg8[%c1_71, %c0_72, %109, %c0_73] : memref<4x3x18x16xf32, #tpu.memory_space<vmem>>, vector<1x1x16x16xf32>
    %111 = vector.shape_cast %110 : vector<1x1x16x16xf32> to vector<16x16xf32>
    %c1_74 = arith.constant 1 : index
    %c6_75 = arith.constant 6 : index
    %112 = memref.load %arg3[%c1_74, %c6_75] : memref<4x9xf32, #tpu.memory_space<smem>>
    %113 = vector.broadcast %112 : f32 to vector<16x16xf32>
    %114 = arith.mulf %111, %113 : vector<16x16xf32>
    %c1_76 = arith.constant 1 : index
    %c1_77 = arith.constant 1 : index
    %115 = arith.index_cast %108 : i32 to index
    %c0_78 = arith.constant 0 : index
    %116 = vector.load %arg8[%c1_76, %c1_77, %115, %c0_78] : memref<4x3x18x16xf32, #tpu.memory_space<vmem>>, vector<1x1x16x16xf32>
    %117 = vector.shape_cast %116 : vector<1x1x16x16xf32> to vector<16x16xf32>
    %c1_79 = arith.constant 1 : index
    %c7_80 = arith.constant 7 : index
    %118 = memref.load %arg3[%c1_79, %c7_80] : memref<4x9xf32, #tpu.memory_space<smem>>
    %119 = vector.broadcast %118 : f32 to vector<16x16xf32>
    %120 = arith.mulf %117, %119 : vector<16x16xf32>
    %c1_81 = arith.constant 1 : index
    %c2_82 = arith.constant 2 : index
    %121 = arith.index_cast %108 : i32 to index
    %c0_83 = arith.constant 0 : index
    %122 = vector.load %arg8[%c1_81, %c2_82, %121, %c0_83] : memref<4x3x18x16xf32, #tpu.memory_space<vmem>>, vector<1x1x16x16xf32>
    %123 = vector.shape_cast %122 : vector<1x1x16x16xf32> to vector<16x16xf32>
    %c1_84 = arith.constant 1 : index
    %c8_85 = arith.constant 8 : index
    %124 = memref.load %arg3[%c1_84, %c8_85] : memref<4x9xf32, #tpu.memory_space<smem>>
    %125 = vector.broadcast %124 : f32 to vector<16x16xf32>
    %126 = arith.mulf %123, %125 : vector<16x16xf32>
    %127 = arith.addf %76, %82 : vector<16x16xf32>
    %128 = arith.addf %88, %95 : vector<16x16xf32>
    %129 = arith.addf %101, %107 : vector<16x16xf32>
    %130 = arith.addf %114, %120 : vector<16x16xf32>
    %131 = arith.addf %127, %128 : vector<16x16xf32>
    %132 = arith.addf %129, %130 : vector<16x16xf32>
    %133 = arith.addf %131, %132 : vector<16x16xf32>
    %134 = arith.addf %133, %126 : vector<16x16xf32>
    %c0_i32_86 = arith.constant 0 : i32
    %135 = arith.addi %4, %c0_i32_86 : i32
    %c2_87 = arith.constant 2 : index
    %c0_88 = arith.constant 0 : index
    %136 = arith.index_cast %135 : i32 to index
    %c0_89 = arith.constant 0 : index
    %137 = vector.load %arg8[%c2_87, %c0_88, %136, %c0_89] : memref<4x3x18x16xf32, #tpu.memory_space<vmem>>, vector<1x1x16x16xf32>
    %138 = vector.shape_cast %137 : vector<1x1x16x16xf32> to vector<16x16xf32>
    %c2_90 = arith.constant 2 : index
    %c0_91 = arith.constant 0 : index
    %139 = memref.load %arg3[%c2_90, %c0_91] : memref<4x9xf32, #tpu.memory_space<smem>>
    %140 = vector.broadcast %139 : f32 to vector<16x16xf32>
    %141 = arith.mulf %138, %140 : vector<16x16xf32>
    %c2_92 = arith.constant 2 : index
    %c1_93 = arith.constant 1 : index
    %142 = arith.index_cast %135 : i32 to index
    %c0_94 = arith.constant 0 : index
    %143 = vector.load %arg8[%c2_92, %c1_93, %142, %c0_94] : memref<4x3x18x16xf32, #tpu.memory_space<vmem>>, vector<1x1x16x16xf32>
    %144 = vector.shape_cast %143 : vector<1x1x16x16xf32> to vector<16x16xf32>
    %c2_95 = arith.constant 2 : index
    %c1_96 = arith.constant 1 : index
    %145 = memref.load %arg3[%c2_95, %c1_96] : memref<4x9xf32, #tpu.memory_space<smem>>
    %146 = vector.broadcast %145 : f32 to vector<16x16xf32>
    %147 = arith.mulf %144, %146 : vector<16x16xf32>
    %c2_97 = arith.constant 2 : index
    %c2_98 = arith.constant 2 : index
    %148 = arith.index_cast %135 : i32 to index
    %c0_99 = arith.constant 0 : index
    %149 = vector.load %arg8[%c2_97, %c2_98, %148, %c0_99] : memref<4x3x18x16xf32, #tpu.memory_space<vmem>>, vector<1x1x16x16xf32>
    %150 = vector.shape_cast %149 : vector<1x1x16x16xf32> to vector<16x16xf32>
    %c2_100 = arith.constant 2 : index
    %c2_101 = arith.constant 2 : index
    %151 = memref.load %arg3[%c2_100, %c2_101] : memref<4x9xf32, #tpu.memory_space<smem>>
    %152 = vector.broadcast %151 : f32 to vector<16x16xf32>
    %153 = arith.mulf %150, %152 : vector<16x16xf32>
    %c1_i32_102 = arith.constant 1 : i32
    %154 = arith.addi %4, %c1_i32_102 : i32
    %c2_103 = arith.constant 2 : index
    %c0_104 = arith.constant 0 : index
    %155 = arith.index_cast %154 : i32 to index
    %c0_105 = arith.constant 0 : index
    %156 = vector.load %arg8[%c2_103, %c0_104, %155, %c0_105] : memref<4x3x18x16xf32, #tpu.memory_space<vmem>>, vector<1x1x16x16xf32>
    %157 = vector.shape_cast %156 : vector<1x1x16x16xf32> to vector<16x16xf32>
    %c2_106 = arith.constant 2 : index
    %c3_107 = arith.constant 3 : index
    %158 = memref.load %arg3[%c2_106, %c3_107] : memref<4x9xf32, #tpu.memory_space<smem>>
    %159 = vector.broadcast %158 : f32 to vector<16x16xf32>
    %160 = arith.mulf %157, %159 : vector<16x16xf32>
    %c2_108 = arith.constant 2 : index
    %c1_109 = arith.constant 1 : index
    %161 = arith.index_cast %154 : i32 to index
    %c0_110 = arith.constant 0 : index
    %162 = vector.load %arg8[%c2_108, %c1_109, %161, %c0_110] : memref<4x3x18x16xf32, #tpu.memory_space<vmem>>, vector<1x1x16x16xf32>
    %163 = vector.shape_cast %162 : vector<1x1x16x16xf32> to vector<16x16xf32>
    %c2_111 = arith.constant 2 : index
    %c4_112 = arith.constant 4 : index
    %164 = memref.load %arg3[%c2_111, %c4_112] : memref<4x9xf32, #tpu.memory_space<smem>>
    %165 = vector.broadcast %164 : f32 to vector<16x16xf32>
    %166 = arith.mulf %163, %165 : vector<16x16xf32>
    %c2_113 = arith.constant 2 : index
    %c2_114 = arith.constant 2 : index
    %167 = arith.index_cast %154 : i32 to index
    %c0_115 = arith.constant 0 : index
    %168 = vector.load %arg8[%c2_113, %c2_114, %167, %c0_115] : memref<4x3x18x16xf32, #tpu.memory_space<vmem>>, vector<1x1x16x16xf32>
    %169 = vector.shape_cast %168 : vector<1x1x16x16xf32> to vector<16x16xf32>
    %c2_116 = arith.constant 2 : index
    %c5_117 = arith.constant 5 : index
    %170 = memref.load %arg3[%c2_116, %c5_117] : memref<4x9xf32, #tpu.memory_space<smem>>
    %171 = vector.broadcast %170 : f32 to vector<16x16xf32>
    %172 = arith.mulf %169, %171 : vector<16x16xf32>
    %c2_i32_118 = arith.constant 2 : i32
    %173 = arith.addi %4, %c2_i32_118 : i32
    %c2_119 = arith.constant 2 : index
    %c0_120 = arith.constant 0 : index
    %174 = arith.index_cast %173 : i32 to index
    %c0_121 = arith.constant 0 : index
    %175 = vector.load %arg8[%c2_119, %c0_120, %174, %c0_121] : memref<4x3x18x16xf32, #tpu.memory_space<vmem>>, vector<1x1x16x16xf32>
    %176 = vector.shape_cast %175 : vector<1x1x16x16xf32> to vector<16x16xf32>
    %c2_122 = arith.constant 2 : index
    %c6_123 = arith.constant 6 : index
    %177 = memref.load %arg3[%c2_122, %c6_123] : memref<4x9xf32, #tpu.memory_space<smem>>
    %178 = vector.broadcast %177 : f32 to vector<16x16xf32>
    %179 = arith.mulf %176, %178 : vector<16x16xf32>
    %c2_124 = arith.constant 2 : index
    %c1_125 = arith.constant 1 : index
    %180 = arith.index_cast %173 : i32 to index
    %c0_126 = arith.constant 0 : index
    %181 = vector.load %arg8[%c2_124, %c1_125, %180, %c0_126] : memref<4x3x18x16xf32, #tpu.memory_space<vmem>>, vector<1x1x16x16xf32>
    %182 = vector.shape_cast %181 : vector<1x1x16x16xf32> to vector<16x16xf32>
    %c2_127 = arith.constant 2 : index
    %c7_128 = arith.constant 7 : index
    %183 = memref.load %arg3[%c2_127, %c7_128] : memref<4x9xf32, #tpu.memory_space<smem>>
    %184 = vector.broadcast %183 : f32 to vector<16x16xf32>
    %185 = arith.mulf %182, %184 : vector<16x16xf32>
    %c2_129 = arith.constant 2 : index
    %c2_130 = arith.constant 2 : index
    %186 = arith.index_cast %173 : i32 to index
    %c0_131 = arith.constant 0 : index
    %187 = vector.load %arg8[%c2_129, %c2_130, %186, %c0_131] : memref<4x3x18x16xf32, #tpu.memory_space<vmem>>, vector<1x1x16x16xf32>
    %188 = vector.shape_cast %187 : vector<1x1x16x16xf32> to vector<16x16xf32>
    %c2_132 = arith.constant 2 : index
    %c8_133 = arith.constant 8 : index
    %189 = memref.load %arg3[%c2_132, %c8_133] : memref<4x9xf32, #tpu.memory_space<smem>>
    %190 = vector.broadcast %189 : f32 to vector<16x16xf32>
    %191 = arith.mulf %188, %190 : vector<16x16xf32>
    %192 = arith.addf %141, %147 : vector<16x16xf32>
    %193 = arith.addf %153, %160 : vector<16x16xf32>
    %194 = arith.addf %166, %172 : vector<16x16xf32>
    %195 = arith.addf %179, %185 : vector<16x16xf32>
    %196 = arith.addf %192, %193 : vector<16x16xf32>
    %197 = arith.addf %194, %195 : vector<16x16xf32>
    %198 = arith.addf %196, %197 : vector<16x16xf32>
    %199 = arith.addf %198, %191 : vector<16x16xf32>
    %c0_i32_134 = arith.constant 0 : i32
    %200 = arith.addi %4, %c0_i32_134 : i32
    %c3_135 = arith.constant 3 : index
    %c0_136 = arith.constant 0 : index
    %201 = arith.index_cast %200 : i32 to index
    %c0_137 = arith.constant 0 : index
    %202 = vector.load %arg8[%c3_135, %c0_136, %201, %c0_137] : memref<4x3x18x16xf32, #tpu.memory_space<vmem>>, vector<1x1x16x16xf32>
    %203 = vector.shape_cast %202 : vector<1x1x16x16xf32> to vector<16x16xf32>
    %c3_138 = arith.constant 3 : index
    %c0_139 = arith.constant 0 : index
    %204 = memref.load %arg3[%c3_138, %c0_139] : memref<4x9xf32, #tpu.memory_space<smem>>
    %205 = vector.broadcast %204 : f32 to vector<16x16xf32>
    %206 = arith.mulf %203, %205 : vector<16x16xf32>
    %c3_140 = arith.constant 3 : index
    %c1_141 = arith.constant 1 : index
    %207 = arith.index_cast %200 : i32 to index
    %c0_142 = arith.constant 0 : index
    %208 = vector.load %arg8[%c3_140, %c1_141, %207, %c0_142] : memref<4x3x18x16xf32, #tpu.memory_space<vmem>>, vector<1x1x16x16xf32>
    %209 = vector.shape_cast %208 : vector<1x1x16x16xf32> to vector<16x16xf32>
    %c3_143 = arith.constant 3 : index
    %c1_144 = arith.constant 1 : index
    %210 = memref.load %arg3[%c3_143, %c1_144] : memref<4x9xf32, #tpu.memory_space<smem>>
    %211 = vector.broadcast %210 : f32 to vector<16x16xf32>
    %212 = arith.mulf %209, %211 : vector<16x16xf32>
    %c3_145 = arith.constant 3 : index
    %c2_146 = arith.constant 2 : index
    %213 = arith.index_cast %200 : i32 to index
    %c0_147 = arith.constant 0 : index
    %214 = vector.load %arg8[%c3_145, %c2_146, %213, %c0_147] : memref<4x3x18x16xf32, #tpu.memory_space<vmem>>, vector<1x1x16x16xf32>
    %215 = vector.shape_cast %214 : vector<1x1x16x16xf32> to vector<16x16xf32>
    %c3_148 = arith.constant 3 : index
    %c2_149 = arith.constant 2 : index
    %216 = memref.load %arg3[%c3_148, %c2_149] : memref<4x9xf32, #tpu.memory_space<smem>>
    %217 = vector.broadcast %216 : f32 to vector<16x16xf32>
    %218 = arith.mulf %215, %217 : vector<16x16xf32>
    %c1_i32_150 = arith.constant 1 : i32
    %219 = arith.addi %4, %c1_i32_150 : i32
    %c3_151 = arith.constant 3 : index
    %c0_152 = arith.constant 0 : index
    %220 = arith.index_cast %219 : i32 to index
    %c0_153 = arith.constant 0 : index
    %221 = vector.load %arg8[%c3_151, %c0_152, %220, %c0_153] : memref<4x3x18x16xf32, #tpu.memory_space<vmem>>, vector<1x1x16x16xf32>
    %222 = vector.shape_cast %221 : vector<1x1x16x16xf32> to vector<16x16xf32>
    %c3_154 = arith.constant 3 : index
    %c3_155 = arith.constant 3 : index
    %223 = memref.load %arg3[%c3_154, %c3_155] : memref<4x9xf32, #tpu.memory_space<smem>>
    %224 = vector.broadcast %223 : f32 to vector<16x16xf32>
    %225 = arith.mulf %222, %224 : vector<16x16xf32>
    %c3_156 = arith.constant 3 : index
    %c1_157 = arith.constant 1 : index
    %226 = arith.index_cast %219 : i32 to index
    %c0_158 = arith.constant 0 : index
    %227 = vector.load %arg8[%c3_156, %c1_157, %226, %c0_158] : memref<4x3x18x16xf32, #tpu.memory_space<vmem>>, vector<1x1x16x16xf32>
    %228 = vector.shape_cast %227 : vector<1x1x16x16xf32> to vector<16x16xf32>
    %c3_159 = arith.constant 3 : index
    %c4_160 = arith.constant 4 : index
    %229 = memref.load %arg3[%c3_159, %c4_160] : memref<4x9xf32, #tpu.memory_space<smem>>
    %230 = vector.broadcast %229 : f32 to vector<16x16xf32>
    %231 = arith.mulf %228, %230 : vector<16x16xf32>
    %c3_161 = arith.constant 3 : index
    %c2_162 = arith.constant 2 : index
    %232 = arith.index_cast %219 : i32 to index
    %c0_163 = arith.constant 0 : index
    %233 = vector.load %arg8[%c3_161, %c2_162, %232, %c0_163] : memref<4x3x18x16xf32, #tpu.memory_space<vmem>>, vector<1x1x16x16xf32>
    %234 = vector.shape_cast %233 : vector<1x1x16x16xf32> to vector<16x16xf32>
    %c3_164 = arith.constant 3 : index
    %c5_165 = arith.constant 5 : index
    %235 = memref.load %arg3[%c3_164, %c5_165] : memref<4x9xf32, #tpu.memory_space<smem>>
    %236 = vector.broadcast %235 : f32 to vector<16x16xf32>
    %237 = arith.mulf %234, %236 : vector<16x16xf32>
    %c2_i32_166 = arith.constant 2 : i32
    %238 = arith.addi %4, %c2_i32_166 : i32
    %c3_167 = arith.constant 3 : index
    %c0_168 = arith.constant 0 : index
    %239 = arith.index_cast %238 : i32 to index
    %c0_169 = arith.constant 0 : index
    %240 = vector.load %arg8[%c3_167, %c0_168, %239, %c0_169] : memref<4x3x18x16xf32, #tpu.memory_space<vmem>>, vector<1x1x16x16xf32>
    %241 = vector.shape_cast %240 : vector<1x1x16x16xf32> to vector<16x16xf32>
    %c3_170 = arith.constant 3 : index
    %c6_171 = arith.constant 6 : index
    %242 = memref.load %arg3[%c3_170, %c6_171] : memref<4x9xf32, #tpu.memory_space<smem>>
    %243 = vector.broadcast %242 : f32 to vector<16x16xf32>
    %244 = arith.mulf %241, %243 : vector<16x16xf32>
    %c3_172 = arith.constant 3 : index
    %c1_173 = arith.constant 1 : index
    %245 = arith.index_cast %238 : i32 to index
    %c0_174 = arith.constant 0 : index
    %246 = vector.load %arg8[%c3_172, %c1_173, %245, %c0_174] : memref<4x3x18x16xf32, #tpu.memory_space<vmem>>, vector<1x1x16x16xf32>
    %247 = vector.shape_cast %246 : vector<1x1x16x16xf32> to vector<16x16xf32>
    %c3_175 = arith.constant 3 : index
    %c7_176 = arith.constant 7 : index
    %248 = memref.load %arg3[%c3_175, %c7_176] : memref<4x9xf32, #tpu.memory_space<smem>>
    %249 = vector.broadcast %248 : f32 to vector<16x16xf32>
    %250 = arith.mulf %247, %249 : vector<16x16xf32>
    %c3_177 = arith.constant 3 : index
    %c2_178 = arith.constant 2 : index
    %251 = arith.index_cast %238 : i32 to index
    %c0_179 = arith.constant 0 : index
    %252 = vector.load %arg8[%c3_177, %c2_178, %251, %c0_179] : memref<4x3x18x16xf32, #tpu.memory_space<vmem>>, vector<1x1x16x16xf32>
    %253 = vector.shape_cast %252 : vector<1x1x16x16xf32> to vector<16x16xf32>
    %c3_180 = arith.constant 3 : index
    %c8_181 = arith.constant 8 : index
    %254 = memref.load %arg3[%c3_180, %c8_181] : memref<4x9xf32, #tpu.memory_space<smem>>
    %255 = vector.broadcast %254 : f32 to vector<16x16xf32>
    %256 = arith.mulf %253, %255 : vector<16x16xf32>
    %257 = arith.addf %206, %212 : vector<16x16xf32>
    %258 = arith.addf %218, %225 : vector<16x16xf32>
    %259 = arith.addf %231, %237 : vector<16x16xf32>
    %260 = arith.addf %244, %250 : vector<16x16xf32>
    %261 = arith.addf %257, %258 : vector<16x16xf32>
    %262 = arith.addf %259, %260 : vector<16x16xf32>
    %263 = arith.addf %261, %262 : vector<16x16xf32>
    %264 = arith.addf %263, %256 : vector<16x16xf32>
    %c0_182 = arith.constant 0 : index
    %c0_183 = arith.constant 0 : index
    %265 = memref.load %arg4[%c0_182, %c0_183] : memref<8x4xf32, #tpu.memory_space<smem>>
    %266 = vector.broadcast %265 : f32 to vector<16x16xf32>
    %267 = arith.mulf %69, %266 : vector<16x16xf32>
    %c0_184 = arith.constant 0 : index
    %c1_185 = arith.constant 1 : index
    %268 = memref.load %arg4[%c0_184, %c1_185] : memref<8x4xf32, #tpu.memory_space<smem>>
    %269 = vector.broadcast %268 : f32 to vector<16x16xf32>
    %270 = arith.mulf %134, %269 : vector<16x16xf32>
    %c0_186 = arith.constant 0 : index
    %c2_187 = arith.constant 2 : index
    %271 = memref.load %arg4[%c0_186, %c2_187] : memref<8x4xf32, #tpu.memory_space<smem>>
    %272 = vector.broadcast %271 : f32 to vector<16x16xf32>
    %273 = arith.mulf %199, %272 : vector<16x16xf32>
    %c0_188 = arith.constant 0 : index
    %c3_189 = arith.constant 3 : index
    %274 = memref.load %arg4[%c0_188, %c3_189] : memref<8x4xf32, #tpu.memory_space<smem>>
    %275 = vector.broadcast %274 : f32 to vector<16x16xf32>
    %276 = arith.mulf %264, %275 : vector<16x16xf32>
    %277 = arith.addf %267, %270 : vector<16x16xf32>
    %278 = arith.addf %273, %276 : vector<16x16xf32>
    %279 = arith.addf %277, %278 : vector<16x16xf32>
    %c0_190 = arith.constant 0 : index
    %280 = memref.load %arg5[%c0_190] : memref<8xf32, #tpu.memory_space<smem>>
    %281 = vector.broadcast %280 : f32 to vector<16x16xf32>
    %282 = arith.addf %279, %281 : vector<16x16xf32>
    %c0_191 = arith.constant 0 : index
    %c0_192 = arith.constant 0 : index
    %c0_193 = arith.constant 0 : index
    %c0_194 = arith.constant 0 : index
    %283 = vector.load %arg6[%c0_191, %c0_192, %c0_193, %c0_194] : memref<1x8x16x16xf32, #tpu.memory_space<vmem>>, vector<1x1x16x16xf32>
    %284 = vector.shape_cast %283 : vector<1x1x16x16xf32> to vector<16x16xf32>
    %285 = vector.shape_cast %282 : vector<16x16xf32> to vector<1x1x16x16xf32>
    tpu.vector_store %arg6[%c0_191, %c0_192, %c0_193, %c0_194], %285 {strides = array<i32>} : memref<1x8x16x16xf32, #tpu.memory_space<vmem>>, vector<1x1x16x16xf32>,
    %c1_195 = arith.constant 1 : index
    %c0_196 = arith.constant 0 : index
    %286 = memref.load %arg4[%c1_195, %c0_196] : memref<8x4xf32, #tpu.memory_space<smem>>
    %287 = vector.broadcast %286 : f32 to vector<16x16xf32>
    %288 = arith.mulf %69, %287 : vector<16x16xf32>
    %c1_197 = arith.constant 1 : index
    %c1_198 = arith.constant 1 : index
    %289 = memref.load %arg4[%c1_197, %c1_198] : memref<8x4xf32, #tpu.memory_space<smem>>
    %290 = vector.broadcast %289 : f32 to vector<16x16xf32>
    %291 = arith.mulf %134, %290 : vector<16x16xf32>
    %c1_199 = arith.constant 1 : index
    %c2_200 = arith.constant 2 : index
    %292 = memref.load %arg4[%c1_199, %c2_200] : memref<8x4xf32, #tpu.memory_space<smem>>
    %293 = vector.broadcast %292 : f32 to vector<16x16xf32>
    %294 = arith.mulf %199, %293 : vector<16x16xf32>
    %c1_201 = arith.constant 1 : index
    %c3_202 = arith.constant 3 : index
    %295 = memref.load %arg4[%c1_201, %c3_202] : memref<8x4xf32, #tpu.memory_space<smem>>
    %296 = vector.broadcast %295 : f32 to vector<16x16xf32>
    %297 = arith.mulf %264, %296 : vector<16x16xf32>
    %298 = arith.addf %288, %291 : vector<16x16xf32>
    %299 = arith.addf %294, %297 : vector<16x16xf32>
    %300 = arith.addf %298, %299 : vector<16x16xf32>
    %c1_203 = arith.constant 1 : index
    %301 = memref.load %arg5[%c1_203] : memref<8xf32, #tpu.memory_space<smem>>
    %302 = vector.broadcast %301 : f32 to vector<16x16xf32>
    %303 = arith.addf %300, %302 : vector<16x16xf32>
    %c0_204 = arith.constant 0 : index
    %c1_205 = arith.constant 1 : index
    %c0_206 = arith.constant 0 : index
    %c0_207 = arith.constant 0 : index
    %304 = vector.load %arg6[%c0_204, %c1_205, %c0_206, %c0_207] : memref<1x8x16x16xf32, #tpu.memory_space<vmem>>, vector<1x1x16x16xf32>
    %305 = vector.shape_cast %304 : vector<1x1x16x16xf32> to vector<16x16xf32>
    %306 = vector.shape_cast %303 : vector<16x16xf32> to vector<1x1x16x16xf32>
    tpu.vector_store %arg6[%c0_204, %c1_205, %c0_206, %c0_207], %306 {strides = array<i32>} : memref<1x8x16x16xf32, #tpu.memory_space<vmem>>, vector<1x1x16x16xf32>,
    %c2_208 = arith.constant 2 : index
    %c0_209 = arith.constant 0 : index
    %307 = memref.load %arg4[%c2_208, %c0_209] : memref<8x4xf32, #tpu.memory_space<smem>>
    %308 = vector.broadcast %307 : f32 to vector<16x16xf32>
    %309 = arith.mulf %69, %308 : vector<16x16xf32>
    %c2_210 = arith.constant 2 : index
    %c1_211 = arith.constant 1 : index
    %310 = memref.load %arg4[%c2_210, %c1_211] : memref<8x4xf32, #tpu.memory_space<smem>>
    %311 = vector.broadcast %310 : f32 to vector<16x16xf32>
    %312 = arith.mulf %134, %311 : vector<16x16xf32>
    %c2_212 = arith.constant 2 : index
    %c2_213 = arith.constant 2 : index
    %313 = memref.load %arg4[%c2_212, %c2_213] : memref<8x4xf32, #tpu.memory_space<smem>>
    %314 = vector.broadcast %313 : f32 to vector<16x16xf32>
    %315 = arith.mulf %199, %314 : vector<16x16xf32>
    %c2_214 = arith.constant 2 : index
    %c3_215 = arith.constant 3 : index
    %316 = memref.load %arg4[%c2_214, %c3_215] : memref<8x4xf32, #tpu.memory_space<smem>>
    %317 = vector.broadcast %316 : f32 to vector<16x16xf32>
    %318 = arith.mulf %264, %317 : vector<16x16xf32>
    %319 = arith.addf %309, %312 : vector<16x16xf32>
    %320 = arith.addf %315, %318 : vector<16x16xf32>
    %321 = arith.addf %319, %320 : vector<16x16xf32>
    %c2_216 = arith.constant 2 : index
    %322 = memref.load %arg5[%c2_216] : memref<8xf32, #tpu.memory_space<smem>>
    %323 = vector.broadcast %322 : f32 to vector<16x16xf32>
    %324 = arith.addf %321, %323 : vector<16x16xf32>
    %c0_217 = arith.constant 0 : index
    %c2_218 = arith.constant 2 : index
    %c0_219 = arith.constant 0 : index
    %c0_220 = arith.constant 0 : index
    %325 = vector.load %arg6[%c0_217, %c2_218, %c0_219, %c0_220] : memref<1x8x16x16xf32, #tpu.memory_space<vmem>>, vector<1x1x16x16xf32>
    %326 = vector.shape_cast %325 : vector<1x1x16x16xf32> to vector<16x16xf32>
    %327 = vector.shape_cast %324 : vector<16x16xf32> to vector<1x1x16x16xf32>
    tpu.vector_store %arg6[%c0_217, %c2_218, %c0_219, %c0_220], %327 {strides = array<i32>} : memref<1x8x16x16xf32, #tpu.memory_space<vmem>>, vector<1x1x16x16xf32>,
    %c3_221 = arith.constant 3 : index
    %c0_222 = arith.constant 0 : index
    %328 = memref.load %arg4[%c3_221, %c0_222] : memref<8x4xf32, #tpu.memory_space<smem>>
    %329 = vector.broadcast %328 : f32 to vector<16x16xf32>
    %330 = arith.mulf %69, %329 : vector<16x16xf32>
    %c3_223 = arith.constant 3 : index
    %c1_224 = arith.constant 1 : index
    %331 = memref.load %arg4[%c3_223, %c1_224] : memref<8x4xf32, #tpu.memory_space<smem>>
    %332 = vector.broadcast %331 : f32 to vector<16x16xf32>
    %333 = arith.mulf %134, %332 : vector<16x16xf32>
    %c3_225 = arith.constant 3 : index
    %c2_226 = arith.constant 2 : index
    %334 = memref.load %arg4[%c3_225, %c2_226] : memref<8x4xf32, #tpu.memory_space<smem>>
    %335 = vector.broadcast %334 : f32 to vector<16x16xf32>
    %336 = arith.mulf %199, %335 : vector<16x16xf32>
    %c3_227 = arith.constant 3 : index
    %c3_228 = arith.constant 3 : index
    %337 = memref.load %arg4[%c3_227, %c3_228] : memref<8x4xf32, #tpu.memory_space<smem>>
    %338 = vector.broadcast %337 : f32 to vector<16x16xf32>
    %339 = arith.mulf %264, %338 : vector<16x16xf32>
    %340 = arith.addf %330, %333 : vector<16x16xf32>
    %341 = arith.addf %336, %339 : vector<16x16xf32>
    %342 = arith.addf %340, %341 : vector<16x16xf32>
    %c3_229 = arith.constant 3 : index
    %343 = memref.load %arg5[%c3_229] : memref<8xf32, #tpu.memory_space<smem>>
    %344 = vector.broadcast %343 : f32 to vector<16x16xf32>
    %345 = arith.addf %342, %344 : vector<16x16xf32>
    %c0_230 = arith.constant 0 : index
    %c3_231 = arith.constant 3 : index
    %c0_232 = arith.constant 0 : index
    %c0_233 = arith.constant 0 : index
    %346 = vector.load %arg6[%c0_230, %c3_231, %c0_232, %c0_233] : memref<1x8x16x16xf32, #tpu.memory_space<vmem>>, vector<1x1x16x16xf32>
    %347 = vector.shape_cast %346 : vector<1x1x16x16xf32> to vector<16x16xf32>
    %348 = vector.shape_cast %345 : vector<16x16xf32> to vector<1x1x16x16xf32>
    tpu.vector_store %arg6[%c0_230, %c3_231, %c0_232, %c0_233], %348 {strides = array<i32>} : memref<1x8x16x16xf32, #tpu.memory_space<vmem>>, vector<1x1x16x16xf32>,
    %c4_234 = arith.constant 4 : index
    %c0_235 = arith.constant 0 : index
    %349 = memref.load %arg4[%c4_234, %c0_235] : memref<8x4xf32, #tpu.memory_space<smem>>
    %350 = vector.broadcast %349 : f32 to vector<16x16xf32>
    %351 = arith.mulf %69, %350 : vector<16x16xf32>
    %c4_236 = arith.constant 4 : index
    %c1_237 = arith.constant 1 : index
    %352 = memref.load %arg4[%c4_236, %c1_237] : memref<8x4xf32, #tpu.memory_space<smem>>
    %353 = vector.broadcast %352 : f32 to vector<16x16xf32>
    %354 = arith.mulf %134, %353 : vector<16x16xf32>
    %c4_238 = arith.constant 4 : index
    %c2_239 = arith.constant 2 : index
    %355 = memref.load %arg4[%c4_238, %c2_239] : memref<8x4xf32, #tpu.memory_space<smem>>
    %356 = vector.broadcast %355 : f32 to vector<16x16xf32>
    %357 = arith.mulf %199, %356 : vector<16x16xf32>
    %c4_240 = arith.constant 4 : index
    %c3_241 = arith.constant 3 : index
    %358 = memref.load %arg4[%c4_240, %c3_241] : memref<8x4xf32, #tpu.memory_space<smem>>
    %359 = vector.broadcast %358 : f32 to vector<16x16xf32>
    %360 = arith.mulf %264, %359 : vector<16x16xf32>
    %361 = arith.addf %351, %354 : vector<16x16xf32>
    %362 = arith.addf %357, %360 : vector<16x16xf32>
    %363 = arith.addf %361, %362 : vector<16x16xf32>
    %c4_242 = arith.constant 4 : index
    %364 = memref.load %arg5[%c4_242] : memref<8xf32, #tpu.memory_space<smem>>
    %365 = vector.broadcast %364 : f32 to vector<16x16xf32>
    %366 = arith.addf %363, %365 : vector<16x16xf32>
    %c0_243 = arith.constant 0 : index
    %c4_244 = arith.constant 4 : index
    %c0_245 = arith.constant 0 : index
    %c0_246 = arith.constant 0 : index
    %367 = vector.load %arg6[%c0_243, %c4_244, %c0_245, %c0_246] : memref<1x8x16x16xf32, #tpu.memory_space<vmem>>, vector<1x1x16x16xf32>
    %368 = vector.shape_cast %367 : vector<1x1x16x16xf32> to vector<16x16xf32>
    %369 = vector.shape_cast %366 : vector<16x16xf32> to vector<1x1x16x16xf32>
    tpu.vector_store %arg6[%c0_243, %c4_244, %c0_245, %c0_246], %369 {strides = array<i32>} : memref<1x8x16x16xf32, #tpu.memory_space<vmem>>, vector<1x1x16x16xf32>,
    %c5_247 = arith.constant 5 : index
    %c0_248 = arith.constant 0 : index
    %370 = memref.load %arg4[%c5_247, %c0_248] : memref<8x4xf32, #tpu.memory_space<smem>>
    %371 = vector.broadcast %370 : f32 to vector<16x16xf32>
    %372 = arith.mulf %69, %371 : vector<16x16xf32>
    %c5_249 = arith.constant 5 : index
    %c1_250 = arith.constant 1 : index
    %373 = memref.load %arg4[%c5_249, %c1_250] : memref<8x4xf32, #tpu.memory_space<smem>>
    %374 = vector.broadcast %373 : f32 to vector<16x16xf32>
    %375 = arith.mulf %134, %374 : vector<16x16xf32>
    %c5_251 = arith.constant 5 : index
    %c2_252 = arith.constant 2 : index
    %376 = memref.load %arg4[%c5_251, %c2_252] : memref<8x4xf32, #tpu.memory_space<smem>>
    %377 = vector.broadcast %376 : f32 to vector<16x16xf32>
    %378 = arith.mulf %199, %377 : vector<16x16xf32>
    %c5_253 = arith.constant 5 : index
    %c3_254 = arith.constant 3 : index
    %379 = memref.load %arg4[%c5_253, %c3_254] : memref<8x4xf32, #tpu.memory_space<smem>>
    %380 = vector.broadcast %379 : f32 to vector<16x16xf32>
    %381 = arith.mulf %264, %380 : vector<16x16xf32>
    %382 = arith.addf %372, %375 : vector<16x16xf32>
    %383 = arith.addf %378, %381 : vector<16x16xf32>
    %384 = arith.addf %382, %383 : vector<16x16xf32>
    %c5_255 = arith.constant 5 : index
    %385 = memref.load %arg5[%c5_255] : memref<8xf32, #tpu.memory_space<smem>>
    %386 = vector.broadcast %385 : f32 to vector<16x16xf32>
    %387 = arith.addf %384, %386 : vector<16x16xf32>
    %c0_256 = arith.constant 0 : index
    %c5_257 = arith.constant 5 : index
    %c0_258 = arith.constant 0 : index
    %c0_259 = arith.constant 0 : index
    %388 = vector.load %arg6[%c0_256, %c5_257, %c0_258, %c0_259] : memref<1x8x16x16xf32, #tpu.memory_space<vmem>>, vector<1x1x16x16xf32>
    %389 = vector.shape_cast %388 : vector<1x1x16x16xf32> to vector<16x16xf32>
    %390 = vector.shape_cast %387 : vector<16x16xf32> to vector<1x1x16x16xf32>
    tpu.vector_store %arg6[%c0_256, %c5_257, %c0_258, %c0_259], %390 {strides = array<i32>} : memref<1x8x16x16xf32, #tpu.memory_space<vmem>>, vector<1x1x16x16xf32>,
    %c6_260 = arith.constant 6 : index
    %c0_261 = arith.constant 0 : index
    %391 = memref.load %arg4[%c6_260, %c0_261] : memref<8x4xf32, #tpu.memory_space<smem>>
    %392 = vector.broadcast %391 : f32 to vector<16x16xf32>
    %393 = arith.mulf %69, %392 : vector<16x16xf32>
    %c6_262 = arith.constant 6 : index
    %c1_263 = arith.constant 1 : index
    %394 = memref.load %arg4[%c6_262, %c1_263] : memref<8x4xf32, #tpu.memory_space<smem>>
    %395 = vector.broadcast %394 : f32 to vector<16x16xf32>
    %396 = arith.mulf %134, %395 : vector<16x16xf32>
    %c6_264 = arith.constant 6 : index
    %c2_265 = arith.constant 2 : index
    %397 = memref.load %arg4[%c6_264, %c2_265] : memref<8x4xf32, #tpu.memory_space<smem>>
    %398 = vector.broadcast %397 : f32 to vector<16x16xf32>
    %399 = arith.mulf %199, %398 : vector<16x16xf32>
    %c6_266 = arith.constant 6 : index
    %c3_267 = arith.constant 3 : index
    %400 = memref.load %arg4[%c6_266, %c3_267] : memref<8x4xf32, #tpu.memory_space<smem>>
    %401 = vector.broadcast %400 : f32 to vector<16x16xf32>
    %402 = arith.mulf %264, %401 : vector<16x16xf32>
    %403 = arith.addf %393, %396 : vector<16x16xf32>
    %404 = arith.addf %399, %402 : vector<16x16xf32>
    %405 = arith.addf %403, %404 : vector<16x16xf32>
    %c6_268 = arith.constant 6 : index
    %406 = memref.load %arg5[%c6_268] : memref<8xf32, #tpu.memory_space<smem>>
    %407 = vector.broadcast %406 : f32 to vector<16x16xf32>
    %408 = arith.addf %405, %407 : vector<16x16xf32>
    %c0_269 = arith.constant 0 : index
    %c6_270 = arith.constant 6 : index
    %c0_271 = arith.constant 0 : index
    %c0_272 = arith.constant 0 : index
    %409 = vector.load %arg6[%c0_269, %c6_270, %c0_271, %c0_272] : memref<1x8x16x16xf32, #tpu.memory_space<vmem>>, vector<1x1x16x16xf32>
    %410 = vector.shape_cast %409 : vector<1x1x16x16xf32> to vector<16x16xf32>
    %411 = vector.shape_cast %408 : vector<16x16xf32> to vector<1x1x16x16xf32>
    tpu.vector_store %arg6[%c0_269, %c6_270, %c0_271, %c0_272], %411 {strides = array<i32>} : memref<1x8x16x16xf32, #tpu.memory_space<vmem>>, vector<1x1x16x16xf32>,
    %c7_273 = arith.constant 7 : index
    %c0_274 = arith.constant 0 : index
    %412 = memref.load %arg4[%c7_273, %c0_274] : memref<8x4xf32, #tpu.memory_space<smem>>
    %413 = vector.broadcast %412 : f32 to vector<16x16xf32>
    %414 = arith.mulf %69, %413 : vector<16x16xf32>
    %c7_275 = arith.constant 7 : index
    %c1_276 = arith.constant 1 : index
    %415 = memref.load %arg4[%c7_275, %c1_276] : memref<8x4xf32, #tpu.memory_space<smem>>
    %416 = vector.broadcast %415 : f32 to vector<16x16xf32>
    %417 = arith.mulf %134, %416 : vector<16x16xf32>
    %c7_277 = arith.constant 7 : index
    %c2_278 = arith.constant 2 : index
    %418 = memref.load %arg4[%c7_277, %c2_278] : memref<8x4xf32, #tpu.memory_space<smem>>
    %419 = vector.broadcast %418 : f32 to vector<16x16xf32>
    %420 = arith.mulf %199, %419 : vector<16x16xf32>
    %c7_279 = arith.constant 7 : index
    %c3_280 = arith.constant 3 : index
    %421 = memref.load %arg4[%c7_279, %c3_280] : memref<8x4xf32, #tpu.memory_space<smem>>
    %422 = vector.broadcast %421 : f32 to vector<16x16xf32>
    %423 = arith.mulf %264, %422 : vector<16x16xf32>
    %424 = arith.addf %414, %417 : vector<16x16xf32>
    %425 = arith.addf %420, %423 : vector<16x16xf32>
    %426 = arith.addf %424, %425 : vector<16x16xf32>
    %c7_281 = arith.constant 7 : index
    %427 = memref.load %arg5[%c7_281] : memref<8xf32, #tpu.memory_space<smem>>
    %428 = vector.broadcast %427 : f32 to vector<16x16xf32>
    %429 = arith.addf %426, %428 : vector<16x16xf32>
    %c0_282 = arith.constant 0 : index
    %c7_283 = arith.constant 7 : index
    %c0_284 = arith.constant 0 : index
    %c0_285 = arith.constant 0 : index
    %430 = vector.load %arg6[%c0_282, %c7_283, %c0_284, %c0_285] : memref<1x8x16x16xf32, #tpu.memory_space<vmem>>, vector<1x1x16x16xf32>
    %431 = vector.shape_cast %430 : vector<1x1x16x16xf32> to vector<16x16xf32>
    %432 = vector.shape_cast %429 : vector<16x16xf32> to vector<1x1x16x16xf32>
    tpu.vector_store %arg6[%c0_282, %c7_283, %c0_284, %c0_285], %432 {strides = array<i32>} : memref<1x8x16x16xf32, #tpu.memory_space<vmem>>, vector<1x1x16x16xf32>,
    return
  }
  func.func @transform_0(%arg0: i32, %arg1: i32) -> (i32, i32, i32, i32) {
    %c0_i32 = arith.constant 0 : i32
    %c0_i32_0 = arith.constant 0 : i32
    %c0_i32_1 = arith.constant 0 : i32
    %c0_i32_2 = arith.constant 0 : i32
    return %arg0, %c0_i32, %c0_i32_0, %c0_i32_1 : i32, i32, i32, i32
  }
  func.func @transform_1(%arg0: i32, %arg1: i32) -> (i32, i32) {
    %c0_i32 = arith.constant 0 : i32
    %c0_i32_0 = arith.constant 0 : i32
    %c0_i32_1 = arith.constant 0 : i32
    return %c0_i32, %c0_i32_0 : i32, i32
  }
  func.func @transform_2(%arg0: i32, %arg1: i32) -> (i32, i32) {
    %c0_i32 = arith.constant 0 : i32
    %c0_i32_0 = arith.constant 0 : i32
    %c0_i32_1 = arith.constant 0 : i32
    return %c0_i32, %c0_i32_0 : i32, i32
  }
  func.func @transform_3(%arg0: i32, %arg1: i32) -> i32 {
    %c0_i32 = arith.constant 0 : i32
    %c0_i32_0 = arith.constant 0 : i32
    return %c0_i32 : i32
  }
  func.func @transform_4(%arg0: i32, %arg1: i32) -> (i32, i32, i32, i32) {
    %c0_i32 = arith.constant 0 : i32
    %c0_i32_0 = arith.constant 0 : i32
    %c0_i32_1 = arith.constant 0 : i32
    return %arg0, %c0_i32, %arg1, %c0_i32_0 : i32, i32, i32, i32
  }
}

</mosaic_0001>

<bundles_post_ra>
// kernel: tpu_custom_call.1
= control target key start
LH: loop header
LB: loop body
LE: loop exit
PB: predicated region body
PF: predicated region fallthrough
CT: control target
= control target key end

     0   :  { %s2840_s0 = inlined_call_operand.hbm [shape: f32[2,4,16,16], index: 0, kind: input, shape index: {}]   ;;  %s2841_s1 = inlined_call_operand.vmem [shape: f32[4,9], index: 1, kind: input, shape index: {}]   ;;  %s2842_s2 = inlined_call_operand.vmem [shape: f32[8,4], index: 2, kind: input, shape index: {}]   ;;  %s2843_s3 = inlined_call_operand.vmem [shape: f32[8], index: 3, kind: input, shape index: {}]   ;;  %s2844_s4 = inlined_call_operand.hbm [shape: f32[2,8,16,16], index: 4, kind: output, shape index: {}]  }
   0x1   :  { %2926 = sst [smem:[#allocation76_spill]] %s2840_s0 }
   0x2   :  { %2927 = sst [smem:[#allocation77_spill]] %s2841_s1 }
   0x3   :  { %2928 = sst [smem:[#allocation78_spill]] %s2842_s2 }
   0x4   :  { %2929 = sst [smem:[#allocation79_spill]] %s2843_s3 }
   0x5   :  { %2930 = sst [smem:[#allocation80_spill]] %s2844_s4 }
   0x6   :  { %9 = vsyncpa [#allocation5], 0 }
   0x7   :  { %11 = vsyncpa [#allocation5 + $0x1], 0 }
   0x8   :  { %12 = vsyncpa [#allocation7], 0 }
   0x9   :  { %13 = vsyncpa [#allocation10], 0 }
   0xa   :  { %14 = vsyncpa [#allocation6], 0 }
   0xb   :  { %16 = vsyncpa [#allocation6 + $0x1], 0  ;;  %s1821_s15 = smov 0   ;;  %s1823_s16 = smov 0  }
   0xc   :  { %s1825_s17 = smov 0   ;;  %s1827_s18 = smov 0  }
   0xd   :  { %s1829_s19 = smov 0   ;;  %s1831_s20 = smov 0  }
   0xe LB: > { %2931 = sst [smem:[#allocation17_spill]] %s1761_s15  ;;  %s1339_s21 = sadd.s32 4294967295, %s1781_s20   ;;  %s1781_s20 = sphi %s1831_s20, %s22_s20   ;;  %s1777_s19 = sphi %s1829_s19, %s3189_s19   ;;  %s1773_s18 = sphi %s1827_s18, %s3188_s18   ;;  %s1769_s17 = sphi %s1825_s17, %s3187_s17   ;;  %s1765_s16 = sphi %s1823_s16, %s3186_s16   ;;  %s1761_s15 = sphi %s1821_s15, %s3185_s15  }
   0xf   : > { %2932 = sst [smem:[#allocation18_spill]] %s1765_s16  ;;  %s1340_s22 = sadd.s32 4294967294, %s1781_s20  }
  0x10   : > { %2933 = sst [smem:[#allocation19_spill]] %s1769_s17  ;;  %p54_p0 = scmp.ne.s32.totalorder %s1765_s16, %s1761_s15 }
  0x11   : > { %2934 = sst [smem:[#allocation20_spill]] %s1773_s18  ;;  %p1855_p1 = scmp.eq.s32.totalorder %s1339_s21, 0 }
  0x12   : > { %2935 = sst [smem:[#allocation21_spill]] %s1777_s19  ;;  %p1859_p2 = scmp.eq.s32.totalorder %s1339_s21, 1 }
  0x13   : > { %2936 = sst [smem:[#allocation22_spill]] %s1781_s20  ;;  %p149_p3 = scmp.eq.s32.totalorder %s1340_s22, 1 }
  0x14   : > { %s2937_s23 = scalar_select %p1855_p1, 1, 0 }
  0x15   : > { %s2938_s24 = scalar_select %p1859_p2, 1, 0 }
  0x16   : > { %p1865_p4 = por %p1855_p1, %p54_p0  ;;  %p1341_p5 = scmp.ge.s32.totalorder %s1781_s20, 1 }
  0x17   : > { %p1870_p6 = por %p149_p3, %p54_p0  ;;  %p156_p7 = scmp.lt.s32.totalorder %s1781_s20, 3 }
  0x18   : > { %s2939_s25 = scalar_select %p1865_p4, 1, 0 }
  0x19   : > { %s2940_s26 = scalar_select %p1870_p6, 1, 0 }
  0x1a   : > { %s2942_s2 = sld [smem:[#allocation78_spill]]  ;;  %p1878_p8 = pnand %p1341_p5, %p156_p7 }
  0x1b   : > { %2941 = sst [smem:[#allocation23_spill]] %s2940_s26 }
  0x1c   : > { %s2943_s30 = scalar_select %p1878_p8, 1, 0 }
  0x1d   : > { %p1535_p10 = pneg %p1878_p8  ;;  %s2944_s1 = sld [smem:[#allocation77_spill]] }
  0x1e   : > { %s2946_s3 = sld [smem:[#allocation79_spill]] }
  0x1f   : > { %p1890_p11 = pnand %p1535_p10, %p1855_p1 }
  0x20   : > { %s180_s29 = sshll.u32 %s2942_s2, 4  ;;  %s181_s29 = int_to_ptr.vmem [resolvable:$true] %s180_s29 }
  0x21   : > { %s1620_s12 = scalar_lea.vmem %s181_s29, 128  ;;  %p1622_p13 = pneg %p1890_p11 }
  0x22   : > { %p1621_p12 = scmp.ne.s32.totalorder %s181_s29, %s1620_s12  ;;  %p1628_p5 = scmp.lt.s32.totalorder %s181_s29, %s181_s29 }
  0x23   : > { %s169_s7 = sshll.u32 %s2944_s1, 4  ;;  %p1629_p7 = scmp.lt.s32.totalorder %s1620_s12, %s1620_s12  ;;  %s170_s7 = int_to_ptr.vmem [resolvable:$true] %s169_s7 }
  0x24   : > { %s191_s11 = sshll.u32 %s2946_s3, 4  ;;  %p1623_p0 = pnand %p1622_p13, %p1621_p12  ;;  %s1897_s11 = int_to_ptr.vmem [resolvable:$true] %s191_s11 }
  0x25   : > { %p1630_p10 = por %p1629_p7, %p1628_p5 }
  0x26   : > { %p1624_p3 = pneg %p1623_p0 }
  0x28   : > { %p1631_p9 = pnand %p1630_p10, %p1624_p3 }
  0x2a   : > { %1634 = shalt.err (!%p1631_p9)
}
  0x2b   : > { %s1783_s13 = smov [#allocation9]   ;;  %s1635_s14 = scalar_lea.vmem %s170_s7, 64 }
  0x2c   : > { %1541 = dma.vmem_to_smem (!%p1890_p11), %s181_s29, 128, %s1783_s13, [#allocation10]  }
  0x2d   : > { %p1636_p6 = scmp.ne.s32.totalorder %s170_s7, %s1635_s14  ;;  %p1643_p8 = scmp.lt.s32.totalorder %s170_s7, %s170_s7 }
  0x2e   : > { %p1644_p2 = scmp.lt.s32.totalorder %s1635_s14, %s1635_s14 }
  0x2f   : > { %p1638_p1 = pnand %p1636_p6, %p1622_p13 }
  0x30   : > { %p1645_p12 = por %p1644_p2, %p1643_p8 }
  0x31   : > { %p1639_p4 = pneg %p1638_p1 }
  0x33   : > { %p1646_p0 = pnand %p1645_p12, %p1639_p4 }
  0x35   : > { %1649 = shalt.err (!%p1646_p0)
}
  0x36   : > { %s1784_s21 = smov [#allocation8]   ;;  %s1650_s22 = scalar_lea.vmem %s1897_s11, 16 }
  0x37   : > { %1538 = dma.vmem_to_smem (!%p1890_p11), %s170_s7, 64, %s1784_s21, [#allocation7]  }
  0x38   : > { %p1651_p9 = scmp.ne.s32.totalorder %s1897_s11, %s1650_s22  ;;  %p1658_p1 = scmp.lt.s32.totalorder %s1897_s11, %s1897_s11 }
  0x39   : > { %p1659_p5 = scmp.lt.s32.totalorder %s1650_s22, %s1650_s22 }
  0x3a   : > { %p1653_p3 = pnand %p1651_p9, %p1622_p13 }
  0x3b   : > { %p1660_p2 = por %p1659_p5, %p1658_p1 }
  0x3c   : > { %p1654_p6 = pneg %p1653_p3 }
  0x3e   : > { %p1661_p4 = pnand %p1660_p2, %p1654_p6 }
  0x40   : > { %1664 = shalt.err (!%p1661_p4)
}
  0x41   : > { %s1785_s27 = smov [#allocation11]   ;;  %s41_s28 = sadd.s32 1, %s1769_s17 }
  0x42   : > { %1544 = dma.vmem_to_smem (!%p1890_p11), %s1897_s11, 16, %s1785_s27, [#allocation10]  }
  0x43   : > { %s34_s29 = sadd.s32 1, %s1777_s19  ;;  %p48_p8 = scmp.ne.s32.totalorder %s1769_s17, %s1765_s16 }
  0x44   : > { %p36_p13 = scmp.ge.s32.totalorder %s34_s29, 2  ;;  %p49_p7 = scmp.eq.s32.totalorder %s1781_s20, 0 }
  0x45   : > { %p2947_p10 = scmp.ne.s32.totalorder %s2938_s24, 0  ;;  %p1556_p0 = scmp.lt.s32.totalorder %s1781_s20, 2 }
  0x46   : > { %s3191_s29 = smov (%p36_p13, %s34_s29), 0  ;;  %p50_p9 = por %p49_p7, %p48_p8 }
  0x47   : > { %p1928_p12 = por %p2947_p10, %p48_p8  ;;  %2950 = sst [smem:[#allocation25_spill]] %s3191_s29 }
  0x48   : > { %s202_s6 = sand.u32 1, %s1769_s17   ;;  %s38_s7 = ssub.s32 %s1777_s19, %s3191_s29 }
  0x49   : > { %s2948_s5 = scalar_select %p1928_p12, 1, 0 }
  0x4a   : > { %p39_p3 = scmp.eq.s32.totalorder %s38_s7, 0  ;;  %s1346_s8 = sshll.u32 %s202_s6, 6 }
  0x4b   : > { %2949 = sst [smem:[#allocation24_spill]] %s2948_s5  ;;  %s1517_s9 = sshll.u32 %s1777_s19, 10 }
  0x4c   : > { %s1940_s10 = scalar_select %p39_p3, %s1769_s17, %s41_s28  }
  0x4d   : > { %s2952_s0 = sld [smem:[#allocation76_spill]]  ;;  %s206_s13 = scalar_lea.vmem [#allocation4], %s1346_s8 }
  0x4e   : > { %2951 = sst [smem:[#allocation26_spill]] %s1940_s10  ;;  %s213_s14 = sshll.u32 %s206_s13, 4  ;;  %s214_s14 = int_to_ptr.vmem [resolvable:$true] %s213_s14 }
  0x4f   : > { %p1947_p11 = pnand %p1556_p0, %p50_p9  ;;  %s203_s22 = scalar_lea.sflag [#allocation5], %s202_s6 }
  0x50   : > { %s1678_s27 = scalar_lea.vmem %s214_s14, 1024  ;;  %s1786_s28 = smov [#allocation4]  }
  0x51   : > { %p1667_p6 = pneg %p1947_p11  ;;  %p1679_p1 = scmp.ne.s32.totalorder %s214_s14, %s1678_s27 }
  0x52   : > { %s1683_s7 = sshll.u32 %s1786_s28, 4  ;;  %s1684_s7 = int_to_ptr.vmem [resolvable:$false] %s1683_s7 }
  0x53   : > { %s212_s24 = scalar_lea.hbm %s2952_s0, %s1517_s9  ;;  %p1681_p5 = pnand %p1679_p1, %p1667_p6 }
  0x54   : > { %s1685_s9 = scalar_lea.vmem %s1684_s7, 2048  ;;  %p1686_p4 = scmp.lt.s32.totalorder %s214_s14, %s1684_s7 }
  0x55   : > { %p1682_p2 = pneg %p1681_p5  ;;  %p1687_p8 = scmp.lt.s32.totalorder %s1685_s9, %s1678_s27 }
  0x57   : > { %p1688_p13 = por %p1687_p8, %p1686_p4 }
  0x59   : > { %p1689_p7 = pnand %p1688_p13, %p1682_p2 }
  0x5b   : > { %1692 = shalt.err (!%p1689_p7)
}
  0x5c   : > { %s1787_s8 = smov 128   ;;  %s1788_s11 = smov 8  }
  0x5d   : > { %1548 = dma.hbm_to_vmem [thread:$0]  (!%p1947_p11), %s212_s24, 1024, %s214_s14, %s203_s22, %s1787_s8, %s1787_s8, %s1788_s11  }
  0x5e   : > { %p2954_p10 = scmp.ne.s32.totalorder %s2943_s30, 0 }
  0x60   : > { %225 = sbr.rel (%p2954_p10) target bundleno = 487 (0x1e7), region = 36 }
  0x65   : > { %s1958_s6 = sand.u32 1, %s1765_s16   ;;  %p2956_p0 = scmp.ne.s32.totalorder %s2939_s25, 0 }
  0x66   : > { %2955 = sst [smem:[#allocation27_spill]] %s1958_s6  ;;  %s1350_s12 = sshll.u32 %s1958_s6, 6 }
  0x67   : > { %s228_s13 = scalar_lea.sflag [#allocation5], %s1958_s6  ;;  %s1962_s27 = scalar_lea.vmem [#allocation4], %s1350_s12 }
  0x68   : > { %1744 = dma.done.wait (%p2956_p0), %s228_s13, 1024  }
  0x69   : > { %1746 = vsyncadd (%p2956_p0), %s228_s13, 4294966272  ;;  %p2957_p9 = scmp.ne.s32.totalorder %s2937_s23, 0 }
  0x6b   : > { %1748 = dma.done.wait (%p2957_p9), [#allocation7], 64  }
  0x6c   : > { %1750 = vsyncadd (%p2957_p9), [#allocation7], 4294967232 }
  0x6d   : > { %1752 = dma.done.wait (%p2957_p9), [#allocation10], 144  }
  0x6e   : > { %1754 = vsyncadd (%p2957_p9), [#allocation10], 4294967152 }
  0x6f   : > { %248 = sfence }
  0x70   : > { %v288_v0 = vld [vmem:[%s1962_s27] sm:$0xff]  ;;  %v290_v1 = vld [vmem:[%s1962_s27 + $0x10] sm:$0xff]  ;;  %v289_v2 = vld [vmem:[%s1962_s27 + $0x8] sm:$0xff]  ;;  %vm274_vm0 = vcmask 146432   ;;  %s1789_s25 = smov 1   ;;  %v1790_v10 = vmov 0.0  }
  0x71   : > { %v296_v3 = vmax.f32 %v288_v0, 0.0  ;;  %v298_v4 = vmax.f32 %v290_v1, 0.0  ;;  %v291_v5 = vld [vmem:[%s1962_s27 + $0x18] sm:$0xff]  ;;  %v297_v6 = vmax.f32 %v289_v2, 0.0  ;;  %v292_v8 = vld [vmem:[%s1962_s27 + $0x20] sm:$0xff]  ;;  %v293_v9 = vld [vmem:[%s1962_s27 + $0x28] sm:$0xff] }
  0x72   : > { %v299_v7 = vmax.f32 %v291_v5, 0.0  ;;  %275 = vst.msk [vmem:[#allocation2] sm:$0xff] %vm274_vm0, %v1790_v10  ;;  %276 = vst.msk [vmem:[#allocation2 + $0x8] sm:$0xff] %vm274_vm0, %v1790_v10  ;;  %vm277_vm1 = vcmask 140288   ;;  %v300_v11 = vmax.f32 %v292_v8, 0.0  ;;  %v301_v12 = vmax.f32 %v293_v9, 0.0 }
  0x73   : > { %312 = vrot.lane.b32.xlu0 %v296_v3, %s1789_s25  ;;  %316 = vrot.lane.b32.xlu1 %v298_v4, %s1789_s25  ;;  %279 = vst.msk [vmem:[#allocation2 + $0x18] sm:$0xff] %vm274_vm0, %v1790_v10  ;;  %280 = vst.msk [vmem:[#allocation2 + $0x20] sm:$0xff] %vm274_vm0, %v1790_v10  ;;  %v295_v13 = vld [vmem:[%s1962_s27 + $0x38] sm:$0xff]  ;;  %v294_v14 = vld [vmem:[%s1962_s27 + $0x30] sm:$0xff]  ;;  %vm336_vm2 = vcmask 138248   ;;  %vm357_vm3 = vcmask 130048  }
  0x74   : > { %282 = vst.msk [vmem:[#allocation2 + $0x30] sm:$0xff] %vm274_vm0, %v1790_v10  ;;  %283 = vst.msk [vmem:[#allocation2 + $0x38] sm:$0xff] %vm274_vm0, %v1790_v10  ;;  %v303_v15 = vmax.f32 %v295_v13, 0.0  ;;  %v302_v16 = vmax.f32 %v294_v14, 0.0  ;;  %s1791_s23 = smov 127   ;;  %vm360_vm4 = vcmask 123904  }
  0x75   : > { %285 = vst.msk [vmem:[#allocation2 + $0x48] sm:$0xff] %vm274_vm0, %v1790_v10  ;;  %286 = vst.msk [vmem:[#allocation2 + $0x50] sm:$0xff] %vm274_vm0, %v1790_v10  ;;  %s1792_s30 = smov 126   ;;  %s2032_s24 = sld [smem:[#allocation8]] }
  0x76   : > { %278 = vst.msk [vmem:[#allocation2 + $0x10] sm:$0x3] %vm277_vm1, %v1790_v10  ;;  %281 = vst.msk [vmem:[#allocation2 + $0x28] sm:$0x3] %vm277_vm1, %v1790_v10  ;;  %s2034_s14 = sld [smem:[#allocation8 + $0x6]] }
  0x77   : > { %284 = vst.msk [vmem:[#allocation2 + $0x40] sm:$0x3] %vm277_vm1, %v1790_v10  ;;  %287 = vst.msk [vmem:[#allocation2 + $0x58] sm:$0x3] %vm277_vm1, %v1790_v10  ;;  %314 = vrot.lane.b32.xlu0 %v297_v6, %s1789_s25  ;;  %318 = vrot.lane.b32.xlu1 %v299_v7, %s1789_s25  ;;  %s2036_s21 = sld [smem:[#allocation8 + $0x3]] }
  0x78   : > { %s2038_s22 = sld [smem:[#allocation8 + $0x80]] }
  0x79   : > { %s2040_s28 = sld [smem:[#allocation8 + $0x86]] }
  0x7a   : > { %s2042_s7 = sld [smem:[#allocation8 + $0x83]] }
  0x7b   : > { %320 = vrot.lane.b32.xlu0 %v300_v11, %s1789_s25  ;;  %322 = vrot.lane.b32.xlu1 %v301_v12, %s1789_s25  ;;  %s2044_s9 = sld [smem:[#allocation8 + $0x100]]  ;;  %v522_v50 = vstv %s2032_s24 }
  0x7c   : > { %s2046_s8 = sld [smem:[#allocation8 + $0x106]]  ;;  %v570_v51 = vstv %s2034_s14 }
  0x7d   : > { %s2048_s11 = sld [smem:[#allocation8 + $0x180]]  ;;  %v546_v53 = vstv %s2036_s21 }
  0x7e   : > { %s2050_s12 = sld [smem:[#allocation8 + $0x186]]  ;;  %v610_v52 = vstv %s2038_s22 }
  0x7f   : > { %326 = vrot.lane.b32.xlu1 %v303_v15, %s1789_s25  ;;  %324 = vrot.lane.b32.xlu0 %v302_v16, %s1789_s25  ;;  %s2052_s13 = sld [smem:[#allocation8 + $0x103]]  ;;  %v658_v56 = vstv %s2040_s28 }
  0x80   : > { %s2054_s27 = sld [smem:[#allocation8 + $0x183]]  ;;  %v634_v59 = vstv %s2042_s7 }
  0x81   : > { %s2056_s25 = sld [smem:[#allocation8 + $0x1]]  ;;  %v698_v57 = vstv %s2044_s9 }
  0x82   : > { %s2062_s0 = sld [smem:[#allocation8 + $0x81]]  ;;  %v746_v58 = vstv %s2046_s8 }
  0x83   : > { %s2064_s1 = sld [smem:[#allocation8 + $0x84]]  ;;  %v786_v0 = vstv %s2048_s11 }
  0x84   : > { %s2066_s2 = sld [smem:[#allocation8 + $0x87]]  ;;  %v834_v1 = vstv %s2050_s12 }
  0x85   : > { %s2068_s3 = sld [smem:[#allocation8 + $0x101]]  ;;  %v722_v2 = vstv %s2052_s13 }
  0x86   : > { %s2070_s29 = sld [smem:[#allocation8 + $0x104]]  ;;  %v810_v3 = vstv %s2054_s27 }
  0x87   : > { %s2072_s19 = sld [smem:[#allocation8 + $0x107]]  ;;  %v530_v4 = vstv %s2056_s25 }
  0x88   : > { %2960 = sst [smem:[#allocation30_spill]] %s2062_s0  ;;  %v618_v7 = vstv %s2062_s0 }
  0x89   : > { %2961 = sst [smem:[#allocation31_spill]] %s2064_s1  ;;  %v642_v13 = vstv %s2064_s1 }
  0x8a   : > { %2962 = sst [smem:[#allocation32_spill]] %s2066_s2  ;;  %v666_v14 = vstv %s2066_s2 }
  0x8b   : > { %2963 = sst [smem:[#allocation33_spill]] %s2068_s3  ;;  %v706_v16 = vstv %s2068_s3 }
  0x8c   : > { %2964 = sst [smem:[#allocation34_spill]] %s2070_s29 }
  0x8d   : > { %2965 = sst [smem:[#allocation35_spill]] %s2072_s19 }
  0x8e   : > { %s2074_s10 = sld [smem:[#allocation8 + $0x181]] }
  0x8f   : > { %s2076_s17 = sld [smem:[#allocation8 + $0x184]] }
  0x90   : > { %s2078_s16 = sld [smem:[#allocation8 + $0x187]] }
  0x91   : > { %s2080_s20 = sld [smem:[#allocation8 + $0x2]] }
  0x92   : > { %s2082_s26 = sld [smem:[#allocation8 + $0x5]] }
  0x93   : > { %s2084_s15 = sld [smem:[#allocation8 + $0x8]] }
  0x94   : > { %2966 = sst [smem:[#allocation36_spill]] %s2074_s10 }
  0x95   : > { %2967 = sst [smem:[#allocation37_spill]] %s2076_s17 }
  0x96   : > { %2968 = sst [smem:[#allocation38_spill]] %s2078_s16 }
  0x97   : > { %2969 = sst [smem:[#allocation39_spill]] %s2080_s20 }
  0x98   : > { %2970 = sst [smem:[#allocation40_spill]] %s2082_s26 }
  0x99   : > { %2971 = sst [smem:[#allocation41_spill]] %s2084_s15 }
  0x9a   : > { %s2086_s5 = sld [smem:[#allocation9]] }
  0x9b   : > { %s2088_s4 = sld [smem:[#allocation9 + $0x80]] }
  0x9c   : > { %s2090_s18 = sld [smem:[#allocation9 + $0x100]] }
  0x9d   : > { %s2092_s6 = sld [smem:[#allocation9 + $0x180]] }
  0x9e   : > { %s2094_s19 = sld [smem:[#allocation9 + $0x200]] }
  0x9f   : > { %s2096_s10 = sld [smem:[#allocation9 + $0x280]] }
  0xa0   : > { %2972 = sst [smem:[#allocation42_spill]] %s2086_s5 }
  0xa1   : > { %2973 = sst [smem:[#allocation43_spill]] %s2088_s4 }
  0xa2   : > { %2974 = sst [smem:[#allocation44_spill]] %s2090_s18 }
  0xa3   : > { %2975 = sst [smem:[#allocation45_spill]] %s2092_s6 }
  0xa4   : > { %2976 = sst [smem:[#allocation46_spill]] %s2094_s19 }
  0xa5   : > { %2977 = sst [smem:[#allocation47_spill]] %s2096_s10 }
  0xa6   : > { %s2098_s17 = sld [smem:[#allocation9 + $0x300]] }
  0xa7   : > { %s2100_s16 = sld [smem:[#allocation9 + $0x380]] }
  0xa8   : > { %s2102_s20 = sld [smem:[#allocation8 + $0x82]] }
  0xa9   : > { %s2104_s26 = sld [smem:[#allocation8 + $0x85]] }
  0xaa   : > { %s2106_s15 = sld [smem:[#allocation8 + $0x88]] }
  0xab   : > { %s2108_s5 = sld [smem:[#allocation9 + $0x1]] }
  0xac   : > { %2978 = sst [smem:[#allocation48_spill]] %s2098_s17 }
  0xad   : > { %2979 = sst [smem:[#allocation49_spill]] %s2100_s16 }
  0xae   : > { %2980 = sst [smem:[#allocation50_spill]] %s2102_s20 }
  0xaf   : > { %2981 = sst [smem:[#allocation51_spill]] %s2104_s26 }
  0xb0   : > { %s2110_s4 = sld [smem:[#allocation9 + $0x81]] }
  0xb1   : > { %2982 = sst [smem:[#allocation52_spill]] %s2108_s5 }
  0xb2   : > { %s2112_s18 = sld [smem:[#allocation9 + $0x101]] }
  0xb3   : > { %s2114_s6 = sld [smem:[#allocation9 + $0x181]] }
  0xb4   : > { %s2116_s19 = sld [smem:[#allocation9 + $0x201]] }
  0xb5   : > { %s2118_s10 = sld [smem:[#allocation9 + $0x281]] }
  0xb6   : > { %2983 = sst [smem:[#allocation53_spill]] %s2110_s4 }
  0xb7   : > { %s2120_s17 = sld [smem:[#allocation9 + $0x301]] }
  0xb8   : > { %2984 = sst [smem:[#allocation54_spill]] %s2112_s18 }
  0xb9   : > { %2985 = sst [smem:[#allocation55_spill]] %s2114_s6 }
  0xba   : > { %2986 = sst [smem:[#allocation56_spill]] %s2116_s19 }
  0xbb   : > { %2987 = sst [smem:[#allocation57_spill]] %s2118_s10 }
  0xbc   : > { %s2122_s16 = sld [smem:[#allocation9 + $0x381]] }
  0xbd   : > { %2988 = sst [smem:[#allocation58_spill]] %s2120_s17 }
  0xbe   : > { %s2124_s20 = sld [smem:[#allocation8 + $0x102]] }
  0xbf   : > { %s2126_s26 = sld [smem:[#allocation8 + $0x105]] }
  0xc0   : > { %s2128_s5 = sld [smem:[#allocation8 + $0x108]] }
  0xc1   : > { %s2131_s18 = sld [smem:[#allocation8 + $0x182]] }
  0xc2   : > { %2989 = sst [smem:[#allocation59_spill]] %s2122_s16 }
  0xc3   : > { %s2133_s6 = sld [smem:[#allocation9 + $0x2]] }
  0xc4   : > { %s2135_s10 = sld [smem:[#allocation9 + $0x82]] }
  0xc5   : > { %2990 = sst [smem:[#allocation60_spill]] %s2126_s26 }
  0xc6   : > { %s2137_s16 = sld [smem:[#allocation9 + $0x102]] }
  0xc7   : > { %2991 = sst [smem:[#allocation61_spill]] %s2131_s18 }
  0xc8   : > { %s2140_s26 = sld [smem:[#allocation9 + $0x182]] }
  0xc9   : > { %2992 = sst [smem:[#allocation62_spill]] %s2133_s6 }
  0xca   : > { %2993 = sst [smem:[#allocation63_spill]] %s2135_s10 }
  0xcb   : > { %s2143_s18 = sld [smem:[#allocation9 + $0x202]] }
  0xcc   : > { %2994 = sst [smem:[#allocation64_spill]] %s2137_s16 }
  0xcd   : > { %s2145_s6 = sld [smem:[#allocation9 + $0x282]] }
  0xce   : > { %2995 = sst [smem:[#allocation65_spill]] %s2140_s26 }
  0xcf   : > { %s2147_s10 = sld [smem:[#allocation9 + $0x302]] }
  0xd0   : > { %s2150_s16 = sld [smem:[#allocation9 + $0x382]] }
  0xd1   : > { %s2163_s24 = sld [smem:[#allocation8 + $0x188]] }
  0xd2   : > { %s2169_s14 = sld [smem:[#allocation9 + $0x3]] }
  0xd3   : > { %2996 = sst [smem:[#allocation66_spill]] %s2145_s6 }
  0xd4   : > { %s2157_s6 = sld [smem:[#allocation8 + $0x185]] }
  0xd5   : > { %s2998_s22 = sld [smem:[#allocation35_spill]] }
  0xd6   : > { %s2176_s28 = sld [smem:[#allocation11]] }
  0xd7   : > { %s2184_s9 = sld [smem:[#allocation9 + $0x83]] }
  0xd8   : > { %2997 = sst [smem:[#allocation67_spill]] %s2169_s14 }
  0xd9   : > { %s2192_s8 = sld [smem:[#allocation11 + $0x1]] }
  0xda   : > { %s3002_s1 = sld [smem:[#allocation36_spill]] }
  0xdb   : > { %s2215_s3 = sld [smem:[#allocation11 + $0x2]] }
  0xdc   : > { %2999 = sst [smem:[#allocation68_spill]] %s2176_s28 }
  0xdd   : > { %3000 = sst [smem:[#allocation69_spill]] %s2184_s9 }
  0xde   : > { %s3006_s2 = sld [smem:[#allocation38_spill]] }
  0xdf   : > { %3001 = sst [smem:[#allocation70_spill]] %s2192_s8 }
  0xe0   : > { %s2224_s0 = sld [smem:[#allocation9 + $0x183]] }
  0xe1   : > { %3005 = sst [smem:[#allocation72_spill]] %s2215_s3 }
  0xe2   : > { %s3011_s21 = sld [smem:[#allocation41_spill]] }
  0xe3   : > { %s2257_s3 = sld [smem:[#allocation9 + $0x203]] }
  0xe4   : > { %s2273_s8 = sld [smem:[#allocation11 + $0x4]] }
  0xe5   : > { %v313_v17 = vpop.permute.xlu0 %312  ;;  %v317_v18 = vpop.permute.xlu1 %316  ;;  %s3023_s9 = sld [smem:[#allocation51_spill]] }
  0xe6   : > { %337 = vst.msk [vmem:[#allocation2 + $0x1] sm:$0xff] %vm336_vm2, %v313_v17  ;;  %339 = vst.msk [vmem:[#allocation2 + $0x19] sm:$0xff] %vm336_vm2, %v317_v18  ;;  %3007 = sst [smem:[#allocation73_spill]] %s2224_s0 }
  0xe7   : > { %s2283_s12 = sld [smem:[#allocation9 + $0x283]] }
  0xe8   : > { %s2289_s28 = sld [smem:[#allocation11 + $0x5]] }
  0xe9   : > { %v315_v19 = vpop.permute.xlu0 %314  ;;  %v319_v20 = vpop.permute.xlu1 %318  ;;  %3015 = sst [smem:[#allocation74_spill]] %s2257_s3 }
  0xea   : > { %338 = vst.msk [vmem:[#allocation2 + $0x9] sm:$0xff] %vm336_vm2, %v315_v19  ;;  %340 = vst.msk [vmem:[#allocation2 + $0x21] sm:$0xff] %vm336_vm2, %v319_v20  ;;  %3021 = sst [smem:[#allocation75_spill]] %s2273_s8 }
  0xeb   : > { %s3022_s3 = sld [smem:[#allocation50_spill]] }
  0xec   : > { %s2302_s11 = sld [smem:[#allocation11 + $0x6]] }
  0xed   : > { %v345_v21 = vld [vmem:[#allocation2] sm:$0xff]  ;;  %v348_v22 = vld [vmem:[#allocation2 + $0x18] sm:$0xff]  ;;  %v321_v23 = vpop.permute.xlu0 %320  ;;  %v323_v24 = vpop.permute.xlu1 %322  ;;  %s3034_s13 = sld [smem:[#allocation61_spill]] }
  0xee   : > { %358 = vst.msk [vmem:[#allocation3] sm:$0xff] %vm357_vm3, %v345_v21  ;;  %362 = vst.msk [vmem:[#allocation3 + $0x48] sm:$0xff] %vm357_vm3, %v348_v22  ;;  %395 = vrot.lane.b32.xlu0 %v345_v21, %s1791_s23  ;;  %3026 = sst [smem:[#allocation50_spill]] %s2289_s28 }
  0xef   : > { %341 = vst.msk [vmem:[#allocation2 + $0x31] sm:$0xff] %vm336_vm2, %v321_v23  ;;  %342 = vst.msk [vmem:[#allocation2 + $0x39] sm:$0xff] %vm336_vm2, %v323_v24  ;;  %v754_v23 = vstv %s2998_s22  ;;  %s2202_s22 = sld [smem:[#allocation9 + $0x103]] }
  0xf0   : > { %s3035_s0 = sld [smem:[#allocation64_spill]] }
  0xf1   : > { %v346_v25 = vld [vmem:[#allocation2 + $0x8] sm:$0xff]  ;;  %v347_v26 = vld [vmem:[#allocation2 + $0x10] sm:$0x3]  ;;  %v349_v27 = vld [vmem:[#allocation2 + $0x20] sm:$0xff]  ;;  %v327_v28 = vpop.permute.xlu1 %326  ;;  %v325_v29 = vpop.permute.xlu0 %324  ;;  %s2309_s7 = sld [smem:[#allocation9 + $0x383]] }
  0xf2   : > { %359 = vst.msk [vmem:[#allocation3 + $0x8] sm:$0xff] %vm357_vm3, %v346_v25  ;;  %v350_v30 = vld [vmem:[#allocation2 + $0x28] sm:$0x3]  ;;  %363 = vst.msk [vmem:[#allocation3 + $0x50] sm:$0xff] %vm357_vm3, %v349_v27  ;;  %397 = vrot.lane.b32.xlu1 %v346_v25, %s1791_s23  ;;  %v373_v31 = vld [vmem:[#allocation2 + $0x10] sm:$0x3] }
  0xf3   : > { %361 = vst.msk [vmem:[#allocation3 + $0x10] sm:$0x3] %vm360_vm4, %v347_v26  ;;  %364 = vst.msk [vmem:[#allocation3 + $0x58] sm:$0x3] %vm360_vm4, %v350_v30  ;;  %399 = vrot.lane.b32.xlu0 %v373_v31, %s1791_s23  ;;  %v376_v35 = vld [vmem:[#allocation2 + $0x28] sm:$0x3] }
  0xf4   : > { %344 = vst.msk [vmem:[#allocation2 + $0x51] sm:$0xff] %vm336_vm2, %v327_v28  ;;  %343 = vst.msk [vmem:[#allocation2 + $0x49] sm:$0xff] %vm336_vm2, %v325_v29  ;;  %v446_v41 = vld [vmem:[#allocation2 + $0x10] sm:$0x3]  ;;  %v449_v42 = vld [vmem:[#allocation2 + $0x28] sm:$0x3] }
  0xf5   : > { %v519_v54 = vld [vmem:[#allocation3] sm:$0xff]  ;;  %v1379_v55 = vld [vmem:[#allocation3 + $0x48] sm:$0xff]  ;;  %3004 = sst [smem:[#allocation71_spill]] %s2202_s22 }
  0xf6   : > { %v351_v32 = vld [vmem:[#allocation2 + $0x30] sm:$0xff]  ;;  %v352_v33 = vld [vmem:[#allocation2 + $0x38] sm:$0xff]  ;;  %v353_v34 = vld [vmem:[#allocation2 + $0x40] sm:$0x3]  ;;  %401 = vrot.lane.b32.xlu1 %v348_v22, %s1791_s23  ;;  %v2178_v12 = vmul.f32 %v522_v50, %v519_v54  ;;  %v2188_v20 = vmul.f32 %v1379_v55, %v610_v52  ;;  %3032 = sst [smem:[#allocation51_spill]] %s2302_s11 }
  0xf7   : > { %365 = vst.msk [vmem:[#allocation3 + $0x90] sm:$0xff] %vm357_vm3, %v351_v32  ;;  %366 = vst.msk [vmem:[#allocation3 + $0x98] sm:$0xff] %vm357_vm3, %v352_v33  ;;  %403 = vrot.lane.b32.xlu0 %v349_v27, %s1791_s23  ;;  %v379_v39 = vld [vmem:[#allocation2 + $0x40] sm:$0x3]  ;;  %s2315_s4 = sld [smem:[#allocation11 + $0x7]] }
  0xf8   : > { %367 = vst.msk [vmem:[#allocation3 + $0xa0] sm:$0x3] %vm360_vm4, %v353_v34  ;;  %v452_v43 = vld [vmem:[#allocation2 + $0x40] sm:$0x3]  ;;  %s3037_s27 = sld [smem:[#allocation67_spill]] }
  0xf9   : > { %v520_v60 = vld [vmem:[#allocation3 + $0x8] sm:$0xff]  ;;  %v1380_v8 = vld [vmem:[#allocation3 + $0x50] sm:$0xff]  ;;  %s3039_s17 = sld [smem:[#allocation69_spill]] }
  0xfa   : > { %405 = vrot.lane.b32.xlu1 %v376_v35, %s1791_s23  ;;  %v1370_v61 = vld [vmem:[#allocation3 + $0x2] sm:$0xff]  ;;  %v1371_v62 = vld [vmem:[#allocation3 + $0xa] sm:$0xff]  ;;  %v1398_v10 = vld [vmem:[#allocation3 + $0x52] sm:$0xff]  ;;  %v2186_v19 = vmul.f32 %v522_v50, %v520_v60  ;;  %v2198_v28 = vmul.f32 %v1380_v8, %v610_v52  ;;  %s3041_s14 = sld [smem:[#allocation71_spill]] }
  0xfb   : > { %v356_v36 = vld [vmem:[#allocation2 + $0x58] sm:$0x3]  ;;  %v354_v37 = vld [vmem:[#allocation2 + $0x48] sm:$0xff]  ;;  %v355_v38 = vld [vmem:[#allocation2 + $0x50] sm:$0xff]  ;;  %407 = vrot.lane.b32.xlu0 %v351_v32, %s1791_s23  ;;  %v2194_v26 = vmul.f32 %v1370_v61, %v570_v51  ;;  %v2204_v34 = vmul.f32 %v1398_v10, %v658_v56  ;;  %s3045_s22 = sld [smem:[#allocation74_spill]] }
  0xfc   : > { %370 = vst.msk [vmem:[#allocation3 + $0xe8] sm:$0x3] %vm360_vm4, %v356_v36  ;;  %v382_v40 = vld [vmem:[#allocation2 + $0x58] sm:$0x3]  ;;  %v1397_v9 = vld [vmem:[#allocation3 + $0x4a] sm:$0xff]  ;;  %v1361_v18 = vld [vmem:[#allocation3 + $0x1] sm:$0xff] }
  0xfd   : > { %368 = vst.msk [vmem:[#allocation3 + $0xd8] sm:$0xff] %vm357_vm3, %v354_v37  ;;  %369 = vst.msk [vmem:[#allocation3 + $0xe0] sm:$0xff] %vm357_vm3, %v355_v38  ;;  %v455_v44 = vld [vmem:[#allocation2 + $0x58] sm:$0x3]  ;;  %v2200_v29 = vmul.f32 %v1397_v9, %v658_v56  ;;  %v1388_v31 = vld [vmem:[#allocation3 + $0x49] sm:$0xff]  ;;  %s3046_s26 = sld [smem:[#allocation75_spill]] }
  0xfe   : > { %409 = vrot.lane.b32.xlu1 %v352_v33, %s1791_s23  ;;  %v1406_v15 = vld [vmem:[#allocation3 + $0x90] sm:$0xff]  ;;  %v1407_v17 = vld [vmem:[#allocation3 + $0x98] sm:$0xff]  ;;  %v2232_v50 = vmul.f32 %v1388_v31, %v634_v59  ;;  %v674_v31 = vstv %s2106_s15  ;;  %s3061_s8 = sld [smem:[#allocation43_spill]] }
  0xff   : > { %411 = vrot.lane.b32.xlu0 %v379_v39, %s1791_s23  ;;  %v1425_v24 = vld [vmem:[#allocation3 + $0x9a] sm:$0xff]  ;;  %v2206_v35 = vmul.f32 %v1406_v15, %v698_v57  ;;  %v2208_v36 = vmul.f32 %v1407_v17, %v698_v57  ;;  %v842_v57 = vstv %s3006_s2  ;;  %s3062_s11 = sld [smem:[#allocation44_spill]] }
 0x100   : > { %s3063_s25 = sld [smem:[#allocation45_spill]] }
 0x101   : > { %s3064_s19 = sld [smem:[#allocation46_spill]] }
 0x102   : > { %413 = vrot.lane.b32.xlu1 %v354_v37, %s1791_s23  ;;  %s3068_s28 = sld [smem:[#allocation49_spill]] }
 0x103   : > { %415 = vrot.lane.b32.xlu0 %v355_v38, %s1791_s23  ;;  %s3082_s15 = sld [smem:[#allocation52_spill]] }
 0x104   : > { %v1434_v39 = vld [vmem:[#allocation3 + $0xe0] sm:$0xff] }
 0x105   : > { %v1443_v54 = vld [vmem:[#allocation3 + $0xe1] sm:$0xff]  ;;  %v2250_v56 = vmul.f32 %v1434_v39, %v786_v0 }
 0x106   : > { %417 = vrot.lane.b32.xlu1 %v382_v40, %s1791_s23  ;;  %s2058_s23 = sld [smem:[#allocation8 + $0x4]]  ;;  %v2213_v40 = vmul.f32 %v1361_v18, %v546_v53  ;;  %v2281_v9 = vmul.f32 %v1443_v54, %v810_v3 }
 0x107   : > { %468 = vrot.lane.b32.xlu0 %v345_v21, %s1792_s30  ;;  %v730_v21 = vstv %s2070_s29  ;;  %s3003_s29 = sld [smem:[#allocation37_spill]] }
 0x10a   : > { %470 = vrot.lane.b32.xlu1 %v346_v25, %s1792_s30  ;;  %v1362_v25 = vld [vmem:[#allocation3 + $0x9] sm:$0xff] }
 0x10b   : > { %472 = vrot.lane.b32.xlu0 %v446_v41, %s1792_s30  ;;  %v1416_v41 = vld [vmem:[#allocation3 + $0x99] sm:$0xff] }
 0x10c   : > { %2958 = sst [smem:[#allocation28_spill]] %s2058_s23  ;;  %v554_v5 = vstv %s2058_s23 }
 0x10d   : > { %s3008_s23 = sld [smem:[#allocation39_spill]] }
 0x10e   : > { %474 = vrot.lane.b32.xlu1 %v348_v22, %s1792_s30  ;;  %v1424_v22 = vld [vmem:[#allocation3 + $0x92] sm:$0xff] }
 0x10f   : > { %476 = vrot.lane.b32.xlu0 %v349_v27, %s1792_s30  ;;  %v2196_v27 = vmul.f32 %v1371_v62, %v570_v51 }
 0x112   : > { %478 = vrot.lane.b32.xlu1 %v449_v42, %s1792_s30  ;;  %v2217_v42 = vmul.f32 %v1424_v22, %v746_v58 }
 0x113   : > { %480 = vrot.lane.b32.xlu0 %v351_v32, %s1792_s30  ;;  %v1389_v32 = vld [vmem:[#allocation3 + $0x51] sm:$0xff]  ;;  %v538_v62 = vstv %s3008_s23  ;;  %s3066_s23 = sld [smem:[#allocation60_spill]] }
 0x114   : > { %v2236_v51 = vmul.f32 %v1389_v32, %v634_v59 }
 0x116   : > { %482 = vrot.lane.b32.xlu1 %v352_v33, %s1792_s30  ;;  %v1415_v33 = vld [vmem:[#allocation3 + $0x91] sm:$0xff] }
 0x117   : > { %484 = vrot.lane.b32.xlu0 %v452_v43, %s1792_s30  ;;  %v2219_v43 = vmul.f32 %v1425_v24, %v746_v58  ;;  %v2240_v52 = vmul.f32 %v1415_v33, %v722_v2  ;;  %v2255_v58 = vmul.f32 %v1416_v41, %v722_v2  ;;  %v586_v2 = vstv %s3011_s21  ;;  %s2295_s21 = sld [smem:[#allocation9 + $0x303]] }
 0x118   : > { %v626_v24 = vstv %s3022_s3  ;;  %s3086_s3 = sld [smem:[#allocation54_spill]] }
 0x11a   : > { %486 = vrot.lane.b32.xlu1 %v354_v37, %s1792_s30 }
 0x11b   : > { %488 = vrot.lane.b32.xlu0 %v355_v38, %s1792_s30  ;;  %v1433_v38 = vld [vmem:[#allocation3 + $0xd8] sm:$0xff] }
 0x11c   : > { %v2246_v55 = vmul.f32 %v1433_v38, %v786_v0 }
 0x11e   : > { %490 = vrot.lane.b32.xlu1 %v455_v44, %s1792_s30  ;;  %s2060_s30 = sld [smem:[#allocation8 + $0x7]]  ;;  %v794_v44 = vstv %s3002_s1 }
 0x11f   : > { %s2242_s1 = sld [smem:[#allocation11 + $0x3]] }
 0x124   : > { %2959 = sst [smem:[#allocation29_spill]] %s2060_s30  ;;  %v578_v6 = vstv %s2060_s30 }
 0x125   : > { %s3012_s30 = sld [smem:[#allocation42_spill]] }
 0x12b   : > { %v870_v8 = vstv %s3012_s30  ;;  %s3067_s30 = sld [smem:[#allocation48_spill]] }
 0x160   : > { %v396_v45 = vpop.permute.xlu0 %395 }
 0x161   : > { %432 = vst.msk [vmem:[#allocation3 + $0x18] sm:$0xff] %vm357_vm3, %v396_v45  ;;  %v818_v45 = vstv %s3003_s29  ;;  %s3009_s29 = sld [smem:[#allocation40_spill]] }
 0x162   : > { %3010 = sst [smem:[#allocation40_spill]] %s2242_s1 }
 0x163   : > { %s3043_s1 = sld [smem:[#allocation73_spill]] }
 0x164   : > { %v398_v46 = vpop.permute.xlu1 %397  ;;  %s3044_s2 = sld [smem:[#allocation40_spill]] }
 0x165   : > { %433 = vst.msk [vmem:[#allocation3 + $0x20] sm:$0xff] %vm357_vm3, %v398_v46  ;;  %v400_v47 = vpop.permute.xlu0 %399  ;;  %v1451_v46 = vld [vmem:[#allocation3 + $0xda] sm:$0xff] }
 0x166   : > { %434 = vst.msk [vmem:[#allocation3 + $0x28] sm:$0x3] %vm360_vm4, %v400_v47  ;;  %v1452_v47 = vld [vmem:[#allocation3 + $0xe2] sm:$0xff]  ;;  %v2262_v59 = vmul.f32 %v1451_v46, %v834_v1 }
 0x167   : > { %v2266_v61 = vmul.f32 %v1452_v47, %v834_v1  ;;  %v562_v0 = vstv %s3009_s29  ;;  %s3065_s29 = sld [smem:[#allocation47_spill]] }
 0x168   : > { %v402_v48 = vpop.permute.xlu1 %401 }
 0x169   : > { %435 = vst.msk [vmem:[#allocation3 + $0x60] sm:$0xff] %vm357_vm3, %v402_v48  ;;  %v404_v49 = vpop.permute.xlu0 %403  ;;  %v1442_v48 = vld [vmem:[#allocation3 + $0xd9] sm:$0xff] }
 0x16a   : > { %436 = vst.msk [vmem:[#allocation3 + $0x68] sm:$0xff] %vm357_vm3, %v404_v49  ;;  %v2228_v49 = vmul.f32 %v1362_v25, %v546_v53 }
 0x16c   : > { %v406_v63 = vpop.permute.xlu1 %405  ;;  %v1364_v33 = vld [vmem:[#allocation3 + $0x19] sm:$0xff] }
 0x16d   : > { %437 = vst.msk [vmem:[#allocation3 + $0x70] sm:$0x3] %vm360_vm4, %v406_v63  ;;  %v408_v11 = vpop.permute.xlu0 %407  ;;  %v2271_v63 = vmul.f32 %v1442_v48, %v810_v3  ;;  %v1373_v3 = vld [vmem:[#allocation3 + $0x1a] sm:$0xff]  ;;  %v1374_v41 = vld [vmem:[#allocation3 + $0x22] sm:$0xff]  ;;  %v555_v1 = vmul.f32 %v1364_v33, %v554_v5 }
 0x16e   : > { %438 = vst.msk [vmem:[#allocation3 + $0xa8] sm:$0xff] %vm357_vm3, %v408_v11  ;;  %v580_v11 = vmul.f32 %v1374_v41, %v578_v6 }
 0x170   : > { %v410_v30 = vpop.permute.xlu1 %409  ;;  %v1382_v32 = vld [vmem:[#allocation3 + $0x60] sm:$0xff] }
 0x171   : > { %439 = vst.msk [vmem:[#allocation3 + $0xb0] sm:$0xff] %vm357_vm3, %v410_v30  ;;  %v412_v37 = vpop.permute.xlu0 %411  ;;  %v650_v30 = vstv %s3023_s9  ;;  %v1383_v54 = vld [vmem:[#allocation3 + $0x68] sm:$0xff]  ;;  %s3088_s9 = sld [smem:[#allocation55_spill]] }
 0x172   : > { %440 = vst.msk [vmem:[#allocation3 + $0xb8] sm:$0x3] %vm360_vm4, %v412_v37  ;;  %v1356_v37 = vld [vmem:[#allocation3 + $0x20] sm:$0xff] }
 0x173   : > { %v532_v10 = vmul.f32 %v1356_v37, %v530_v4  ;;  %v1391_v48 = vld [vmem:[#allocation3 + $0x61] sm:$0xff] }
 0x174   : > { %v414_v53 = vpop.permute.xlu1 %413  ;;  %v1401_v18 = vld [vmem:[#allocation3 + $0x6a] sm:$0xff] }
 0x175   : > { %441 = vst.msk [vmem:[#allocation3 + $0xf0] sm:$0xff] %vm357_vm3, %v414_v53  ;;  %v416_v60 = vpop.permute.xlu0 %415  ;;  %v1355_v53 = vld [vmem:[#allocation3 + $0x18] sm:$0xff] }
 0x176   : > { %442 = vst.msk [vmem:[#allocation3 + $0xf8] sm:$0xff] %vm357_vm3, %v416_v60  ;;  %v531_v39 = vmul.f32 %v1355_v53, %v530_v4  ;;  %v1365_v53 = vld [vmem:[#allocation3 + $0x21] sm:$0xff] }
 0x178   : > { %v418_v17 = vpop.permute.xlu1 %417  ;;  %v589_v38 = vadd.f32 %v531_v39, %v2178_v12  ;;  %v1409_v12 = vld [vmem:[#allocation3 + $0xa8] sm:$0xff] }
 0x179   : > { %443 = vst.msk [vmem:[#allocation3 + $0x100] sm:$0x3] %vm360_vm4, %v418_v17  ;;  %v469_v25 = vpop.permute.xlu0 %468 }
 0x17a   : > { %505 = vst.msk [vmem:[#allocation3 + $0x30] sm:$0xff] %vm357_vm3, %v469_v25  ;;  %v579_v25 = vmul.f32 %v1373_v3, %v578_v6  ;;  %v620_v3 = vmul.f32 %v1383_v54, %v618_v7 }
 0x17c   : > { %v471_v60 = vpop.permute.xlu1 %470  ;;  %v595_v37 = vadd.f32 %v579_v25, %v2194_v26  ;;  %v596_v26 = vadd.f32 %v580_v11, %v2196_v27 }
 0x17d   : > { %506 = vst.msk [vmem:[#allocation3 + $0x38] sm:$0xff] %vm357_vm3, %v471_v60  ;;  %v473_v47 = vpop.permute.xlu0 %472  ;;  %v1400_v60 = vld [vmem:[#allocation3 + $0x62] sm:$0xff] }
 0x17e   : > { %507 = vst.msk [vmem:[#allocation3 + $0x40] sm:$0x3] %vm360_vm4, %v473_v47  ;;  %v667_v41 = vmul.f32 %v1400_v60, %v666_v14 }
 0x180   : > { %v475_v22 = vpop.permute.xlu1 %474  ;;  %v683_v11 = vadd.f32 %v667_v41, %v2200_v29 }
 0x181   : > { %v1358_v17 = vld [vmem:[#allocation3 + $0x30] sm:$0xff]  ;;  %508 = vst.msk [vmem:[#allocation3 + $0x78] sm:$0xff] %vm357_vm3, %v475_v22  ;;  %v477_v46 = vpop.permute.xlu0 %476 }
 0x182   : > { %509 = vst.msk [vmem:[#allocation3 + $0x80] sm:$0xff] %vm357_vm3, %v477_v46  ;;  %v539_v47 = vmul.f32 %v1358_v17, %v538_v62  ;;  %v556_v46 = vmul.f32 %v1365_v53, %v554_v5  ;;  %v619_v17 = vmul.f32 %v1382_v32, %v618_v7  ;;  %v668_v53 = vmul.f32 %v1401_v18, %v666_v14  ;;  %v1392_v7 = vld [vmem:[#allocation3 + $0x69] sm:$0xff] }
 0x183   : > { %v643_v14 = vmul.f32 %v1391_v48, %v642_v13  ;;  %v1410_v18 = vld [vmem:[#allocation3 + $0xb0] sm:$0xff]  ;;  %v644_v48 = vmul.f32 %v1392_v7, %v642_v13 }
 0x184   : > { %v1359_v39 = vld [vmem:[#allocation3 + $0x38] sm:$0xff]  ;;  %v479_v22 = vpop.permute.xlu1 %478  ;;  %v708_v29 = vmul.f32 %v1410_v18, %v706_v16  ;;  %v1436_v13 = vld [vmem:[#allocation3 + $0xf0] sm:$0xff] }
 0x185   : > { %v1367_v15 = vld [vmem:[#allocation3 + $0x31] sm:$0xff]  ;;  %v540_v4 = vmul.f32 %v1359_v39, %v538_v62  ;;  %v1368_v5 = vld [vmem:[#allocation3 + $0x39] sm:$0xff]  ;;  %510 = vst.msk [vmem:[#allocation3 + $0x88] sm:$0x3] %vm360_vm4, %v479_v22  ;;  %v481_v6 = vpop.permute.xlu0 %480  ;;  %v707_v62 = vmul.f32 %v1409_v12, %v706_v16  ;;  %v590_v39 = vadd.f32 %v532_v10, %v2186_v19  ;;  %v2391_v12 = vadd.f32 %v620_v3, %v2198_v28 }
 0x186   : > { %v563_v33 = vmul.f32 %v1367_v15, %v562_v0  ;;  %v564_v32 = vmul.f32 %v1368_v5, %v562_v0  ;;  %511 = vst.msk [vmem:[#allocation3 + $0xc0] sm:$0xff] %vm357_vm3, %v481_v6  ;;  %v591_v15 = vadd.f32 %v2213_v40, %v539_v47  ;;  %v677_v5 = vadd.f32 %v619_v17, %v2188_v20  ;;  %v1418_v40 = vld [vmem:[#allocation3 + $0xa9] sm:$0xff]  ;;  %v1419_v28 = vld [vmem:[#allocation3 + $0xb1] sm:$0xff] }
 0x187   : > { %v592_v54 = vadd.f32 %v2228_v49, %v540_v4  ;;  %v2400_v47 = vadd.f32 %v668_v53, %v2204_v34  ;;  %v1427_v20 = vld [vmem:[#allocation3 + $0xaa] sm:$0xff]  ;;  %v1428_v3 = vld [vmem:[#allocation3 + $0xb2] sm:$0xff]  ;;  %v2406_v17 = vadd.f32 %v707_v62, %v2206_v35 }
 0x188   : > { %v593_v22 = vadd.f32 %v563_v33, %v555_v1  ;;  %v594_v0 = vadd.f32 %v564_v32, %v556_v46  ;;  %v1385_v25 = vld [vmem:[#allocation3 + $0x78] sm:$0xff]  ;;  %v483_v60 = vpop.permute.xlu1 %482  ;;  %v597_v33 = vadd.f32 %v591_v15, %v589_v38  ;;  %v755_v38 = vmul.f32 %v1427_v20, %v754_v23 }
 0x189   : > { %v627_v19 = vmul.f32 %v1385_v25, %v626_v24  ;;  %v1386_v1 = vld [vmem:[#allocation3 + $0x80] sm:$0xff]  ;;  %512 = vst.msk [vmem:[#allocation3 + $0xc8] sm:$0xff] %vm357_vm3, %v483_v60  ;;  %v485_v10 = vpop.permute.xlu0 %484  ;;  %v1437_v4 = vld [vmem:[#allocation3 + $0xf8] sm:$0xff]  ;;  %v598_v6 = vadd.f32 %v592_v54, %v590_v39  ;;  %v756_v15 = vmul.f32 %v1428_v3, %v754_v23 }
 0x18a   : > { %v599_v49 = vadd.f32 %v595_v37, %v593_v22  ;;  %v1394_v27 = vld [vmem:[#allocation3 + $0x79] sm:$0xff]  ;;  %513 = vst.msk [vmem:[#allocation3 + $0xd0] sm:$0x3] %vm360_vm4, %v485_v10  ;;  %v600_v53 = vadd.f32 %v596_v26, %v594_v0  ;;  %v628_v35 = vmul.f32 %v1386_v1, %v626_v24  ;;  %v2415_v22 = vmul.f32 %v1418_v40, %v730_v21 }
 0x18b   : > { %v651_v46 = vmul.f32 %v1394_v27, %v650_v30  ;;  %v1454_v34 = vld [vmem:[#allocation3 + $0xf2] sm:$0xff]  ;;  %v1455_v37 = vld [vmem:[#allocation3 + $0xfa] sm:$0xff]  ;;  %v679_v32 = vadd.f32 %v2232_v50, %v627_v19  ;;  %v2424_v50 = vmul.f32 %v1419_v28, %v730_v21  ;;  %v795_v24 = vmul.f32 %v1436_v13, %v794_v44 }
 0x18c   : > { %v1376_v41 = vld [vmem:[#allocation3 + $0x32] sm:$0xff]  ;;  %v1395_v16 = vld [vmem:[#allocation3 + $0x81] sm:$0xff]  ;;  %v487_v62 = vpop.permute.xlu1 %486  ;;  %v601_v54 = vadd.f32 %v599_v49, %v597_v33  ;;  %v796_v26 = vmul.f32 %v1437_v4, %v794_v44  ;;  %v843_v18 = vmul.f32 %v1454_v34, %v842_v57  ;;  %v2434_v0 = vadd.f32 %v708_v29, %v2208_v36 }
 0x18d   : > { %v681_v7 = vadd.f32 %v651_v46, %v643_v14  ;;  %514 = vst.msk [vmem:[#allocation3 + $0x108] sm:$0xff] %vm357_vm3, %v487_v62  ;;  %v489_v39 = vpop.permute.xlu0 %488  ;;  %v1445_v14 = vld [vmem:[#allocation3 + $0xf1] sm:$0xff]  ;;  %v844_v23 = vmul.f32 %v1455_v37, %v842_v57  ;;  %v587_v25 = vmul.f32 %v1376_v41, %v586_v2  ;;  %v1377_v60 = vld [vmem:[#allocation3 + $0x3a] sm:$0xff]  ;;  %v652_v21 = vmul.f32 %v1395_v16, %v650_v30  ;;  %v1404_v28 = vld [vmem:[#allocation3 + $0x82] sm:$0xff] }
 0x18e   : > { %515 = vst.msk [vmem:[#allocation3 + $0x110] sm:$0xff] %vm357_vm3, %v489_v39  ;;  %v1446_v40 = vld [vmem:[#allocation3 + $0xf9] sm:$0xff]  ;;  %v602_v49 = vadd.f32 %v600_v53, %v598_v6  ;;  %v685_v44 = vadd.f32 %v679_v32, %v677_v5  ;;  %v680_v1 = vadd.f32 %v2236_v51, %v628_v35  ;;  %v2444_v36 = vadd.f32 %v755_v38, %v2217_v42 }
 0x18f   : > { %v1403_v19 = vld [vmem:[#allocation3 + $0x7a] sm:$0xff]  ;;  %v687_v27 = vadd.f32 %v683_v11, %v681_v7  ;;  %v2447_v57 = vadd.f32 %v756_v15, %v2219_v43  ;;  %v2451_v20 = vmul.f32 %v1445_v14, %v818_v45  ;;  %v603_v30 = vadd.f32 %v601_v54, %v587_v25 }
 0x190   : > { %v491_v10 = vpop.permute.xlu1 %490  ;;  %v2455_v5 = vadd.f32 %v795_v24, %v2246_v55  ;;  %v2458_v51 = vadd.f32 %v796_v26, %v2250_v56  ;;  %v2461_v42 = vadd.f32 %v843_v18, %v2262_v59  ;;  %v588_v43 = vmul.f32 %v1377_v60, %v586_v2  ;;  %v1412_v11 = vld [vmem:[#allocation3 + $0xc0] sm:$0xff]  ;;  %v1413_v4 = vld [vmem:[#allocation3 + $0xc8] sm:$0xff] }
 0x191   : > { %516 = vst.msk [vmem:[#allocation3 + $0x118] sm:$0x3] %vm360_vm4, %v491_v10  ;;  %v2467_v3 = vmul.f32 %v1446_v40, %v818_v45  ;;  %v2470_v55 = vadd.f32 %v844_v23, %v2266_v61  ;;  %v675_v56 = vmul.f32 %v1403_v19, %v674_v31  ;;  %v682_v46 = vadd.f32 %v652_v21, %v644_v48  ;;  %v1421_v59 = vld [vmem:[#allocation3 + $0xc1] sm:$0xff]  ;;  %v1422_v61 = vld [vmem:[#allocation3 + $0xc9] sm:$0xff] }
 0x192   : > { %v604_v29 = vadd.f32 %v602_v49, %v588_v43  ;;  %v686_v2 = vadd.f32 %v680_v1, %v2391_v12  ;;  %v689_v13 = vadd.f32 %v687_v27, %v685_v44  ;;  %v676_v45 = vmul.f32 %v1404_v28, %v674_v31  ;;  %v1430_v44 = vld [vmem:[#allocation3 + $0xc2] sm:$0xff]  ;;  %v1431_v28 = vld [vmem:[#allocation3 + $0xca] sm:$0xff] }
 0x193   : > { %v871_v34 = vmul.f32 %v870_v8, %v603_v30  ;;  %v3069_v33 = vstv %s3061_s8  ;;  %v3070_v48 = vstv %s3062_s11  ;;  %v3071_v41 = vstv %s2124_s20  ;;  %s3084_s20 = sld [smem:[#allocation53_spill]] }
 0x194   : > { %v900_v6 = vmul.f32 %v3069_v33, %v603_v30  ;;  %v929_v37 = vmul.f32 %v3070_v48, %v603_v30  ;;  %v715_v53 = vmul.f32 %v1412_v11, %v3071_v41  ;;  %v3072_v12 = vstv %s3063_s25  ;;  %v1439_v43 = vld [vmem:[#allocation3 + $0x108] sm:$0xff]  ;;  %s3091_s8 = sld [smem:[#allocation56_spill]] }
 0x195   : > { %v958_v32 = vmul.f32 %v3072_v12, %v603_v30  ;;  %v3073_v35 = vstv %s3064_s19  ;;  %v3074_v31 = vstv %s3065_s29  ;;  %v3075_v62 = vstv %s3066_s23  ;;  %s3092_s11 = sld [smem:[#allocation57_spill]] }
 0x196   : > { %v987_v7 = vmul.f32 %v3073_v35, %v603_v30  ;;  %v1016_v16 = vmul.f32 %v3074_v31, %v603_v30  ;;  %v739_v38 = vmul.f32 %v1421_v59, %v3075_v62  ;;  %v3076_v15 = vstv %s3067_s30  ;;  %s3093_s25 = sld [smem:[#allocation58_spill]] }
 0x197   : > { %v1045_v54 = vmul.f32 %v3076_v15, %v603_v30  ;;  %v688_v39 = vadd.f32 %v2400_v47, %v682_v46  ;;  %v3077_v24 = vmov %v3071_v41  ;;  %v3078_v14 = vmov %v3075_v62  ;;  %s3100_s19 = sld [smem:[#allocation59_spill]] }
 0x198   : > { %v716_v26 = vmul.f32 %v1413_v4, %v3077_v24  ;;  %v740_v18 = vmul.f32 %v1422_v61, %v3078_v14  ;;  %v3079_v23 = vstv %s3068_s28  ;;  %v2506_v60 = vmul.f32 %v870_v8, %v604_v29  ;;  %s3122_s29 = sld [smem:[#allocation66_spill]] }
 0x199   : > { %v2502_v25 = vmul.f32 %v3079_v23, %v603_v30  ;;  %v3080_v21 = vmov %v3069_v33  ;;  %v691_v49 = vadd.f32 %v689_v13, %v675_v56  ;;  %v3081_v19 = vmov %v3070_v48  ;;  %v1448_v33 = vld [vmem:[#allocation3 + $0x109] sm:$0xff]  ;;  %s3141_s30 = sld [smem:[#allocation68_spill]] }
 0x19a   : > { %v2510_v40 = vmul.f32 %v3080_v21, %v604_v29  ;;  %v2514_v47 = vmul.f32 %v3081_v19, %v604_v29  ;;  %v3083_v1 = vmov %v3072_v12  ;;  %v3085_v10 = vmov %v3073_v35  ;;  %s3142_s28 = sld [smem:[#allocation70_spill]] }
 0x19b   : > { %v2518_v27 = vmul.f32 %v3083_v1, %v604_v29  ;;  %v2522_v30 = vmul.f32 %v3085_v10, %v604_v29  ;;  %v767_v8 = vadd.f32 %v2240_v52, %v715_v53  ;;  %v3087_v11 = vmov %v3074_v31 }
 0x19c   : > { %v2527_v56 = vmul.f32 %v3087_v11, %v604_v29  ;;  %v3089_v46 = vmov %v3076_v15  ;;  %v3090_v13 = vmov %v3079_v23  ;;  %v769_v61 = vadd.f32 %v739_v38, %v2415_v22  ;;  %v1440_v22 = vld [vmem:[#allocation3 + $0x110] sm:$0xff] }
 0x19d   : > { %v2531_v59 = vmul.f32 %v3089_v46, %v604_v29  ;;  %v2535_v4 = vmul.f32 %v3090_v13, %v604_v29  ;;  %v690_v52 = vadd.f32 %v688_v39, %v686_v2  ;;  %v3094_v48 = vstv %s2128_s5  ;;  %s3117_s5 = sld [smem:[#allocation62_spill]] }
 0x19e   : > { %v763_v41 = vmul.f32 %v1430_v44, %v3094_v48  ;;  %v768_v53 = vadd.f32 %v2255_v58, %v716_v26  ;;  %v770_v12 = vadd.f32 %v740_v18, %v2424_v50  ;;  %v3095_v35 = vstv %s3082_s15 }
 0x19f   : > { %v875_v31 = vmul.f32 %v3095_v35, %v691_v49  ;;  %v3096_v62 = vstv %s3084_s20  ;;  %v3097_v24 = vmov %v3094_v48  ;;  %v3098_v14 = vstv %s3034_s13  ;;  %s3120_s13 = sld [smem:[#allocation65_spill]] }
 0x1a0   : > { %v904_v15 = vmul.f32 %v3096_v62, %v691_v49  ;;  %v764_v29 = vmul.f32 %v1431_v28, %v3097_v24  ;;  %v803_v23 = vmul.f32 %v1439_v43, %v3098_v14  ;;  %v3099_v38 = vstv %s3086_s3  ;;  %v1449_v43 = vld [vmem:[#allocation3 + $0x111] sm:$0xff]  ;;  %s3145_s3 = sld [smem:[#allocation51_spill]] }
 0x1a1   : > { %v933_v21 = vmul.f32 %v3099_v38, %v691_v49  ;;  %v3101_v2 = vstv %s3088_s9  ;;  %v773_v44 = vadd.f32 %v767_v8, %v2406_v17  ;;  %v3102_v58 = vstv %s2157_s6  ;;  %s3119_s6 = sld [smem:[#allocation63_spill]] }
 0x1a2   : > { %v962_v39 = vmul.f32 %v3101_v2, %v691_v49  ;;  %v827_v26 = vmul.f32 %v1448_v33, %v3102_v58  ;;  %v3103_v50 = vstv %s3091_s8  ;;  %v3104_v19 = vstv %s3092_s11 }
 0x1a3   : > { %v991_v18 = vmul.f32 %v3103_v50, %v691_v49  ;;  %v1020_v1 = vmul.f32 %v3104_v19, %v691_v49  ;;  %v3105_v10 = vstv %s3093_s25  ;;  %v775_v28 = vadd.f32 %v2444_v36, %v769_v61 }
 0x1a4   : > { %v1049_v11 = vmul.f32 %v3105_v10, %v691_v49  ;;  %v692_v46 = vadd.f32 %v690_v52, %v676_v45  ;;  %v774_v13 = vadd.f32 %v768_v53, %v2434_v0  ;;  %v776_v48 = vadd.f32 %v2447_v57, %v770_v12 }
 0x1a5   : > { %v3106_v17 = vmov %v3098_v14  ;;  %v2568_v33 = vadd.f32 %v875_v31, %v871_v34  ;;  %v2570_v35 = vadd.f32 %v904_v15, %v900_v6  ;;  %v3107_v62 = vstv %s3100_s19  ;;  %v1457_v15 = vld [vmem:[#allocation3 + $0x10a] sm:$0xff] }
 0x1a6   : > { %v804_v8 = vmul.f32 %v1440_v22, %v3106_v17  ;;  %v1078_v24 = vmul.f32 %v3107_v62, %v691_v49  ;;  %v855_v36 = vadd.f32 %v2271_v63, %v803_v23  ;;  %v2575_v45 = vadd.f32 %v933_v21, %v929_v37  ;;  %v1458_v21 = vld [vmem:[#allocation3 + $0x112] sm:$0xff] }
 0x1a7   : > { %v2577_v61 = vadd.f32 %v962_v39, %v958_v32  ;;  %v857_v0 = vadd.f32 %v827_v26, %v2451_v20  ;;  %v3108_v57 = vmov %v3102_v58  ;;  %v2582_v34 = vadd.f32 %v991_v18, %v987_v7 }
 0x1a8   : > { %v828_v52 = vmul.f32 %v1449_v43, %v3108_v57  ;;  %v2584_v6 = vadd.f32 %v1020_v1, %v1016_v16  ;;  %v2586_v53 = vadd.f32 %v1049_v11, %v1045_v54  ;;  %v777_v49 = vadd.f32 %v775_v28, %v773_v44 }
 0x1a9   : > { %v3109_v12 = vstv %s3082_s15  ;;  %v3110_v37 = vstv %s3084_s20  ;;  %v778_v32 = vadd.f32 %v776_v48, %v774_v13  ;;  %v856_v20 = vadd.f32 %v2281_v9, %v804_v8  ;;  %s3143_s15 = sld [smem:[#allocation72_spill]] }
 0x1aa   : > { %v876_v63 = vmul.f32 %v3109_v12, %v692_v46  ;;  %v905_v31 = vmul.f32 %v3110_v37, %v692_v46  ;;  %v3111_v14 = vmov %v3099_v38  ;;  %v3112_v22 = vmov %v3101_v2  ;;  %s3144_s20 = sld [smem:[#allocation50_spill]] }
 0x1ab   : > { %v934_v23 = vmul.f32 %v3111_v14, %v692_v46  ;;  %v963_v7 = vmul.f32 %v3112_v22, %v692_v46  ;;  %v3113_v16 = vmov %v3103_v50  ;;  %v861_v54 = vadd.f32 %v855_v36, %v2455_v5 }
 0x1ac   : > { %v992_v38 = vmul.f32 %v3113_v16, %v692_v46  ;;  %v3114_v2 = vmov %v3104_v19  ;;  %v3115_v44 = vmov %v3105_v10  ;;  %v863_v26 = vadd.f32 %v2461_v42, %v857_v0 }
 0x1ad   : > { %v1021_v39 = vmul.f32 %v3114_v2, %v692_v46  ;;  %v1050_v58 = vmul.f32 %v3115_v44, %v692_v46  ;;  %v858_v50 = vadd.f32 %v828_v52, %v2467_v3  ;;  %v1088_v9 = vadd.f32 %v1078_v24, %v2502_v25 }
 0x1ae   : > { %v3116_v18 = vmov %v3107_v62  ;;  %v779_v1 = vadd.f32 %v777_v49, %v763_v41  ;;  %v3118_v10 = vstv %s2163_s24  ;;  %v2612_v5 = vadd.f32 %v876_v63, %v2506_v60  ;;  %s3128_s24 = sld [smem:[#allocation27_spill]] }
 0x1af   : > { %v1079_v19 = vmul.f32 %v3116_v18, %v692_v46  ;;  %v851_v11 = vmul.f32 %v1457_v15, %v3118_v10  ;;  %v2615_v28 = vadd.f32 %v905_v31, %v2510_v40  ;;  %v862_v42 = vadd.f32 %v856_v20, %v2458_v51 }
 0x1b0   : > { %v3121_v3 = vmov %v3118_v10  ;;  %v2621_v43 = vadd.f32 %v934_v23, %v2514_v47  ;;  %v2624_v41 = vadd.f32 %v963_v7, %v2518_v27  ;;  %v2627_v60 = vadd.f32 %v992_v38, %v2522_v30 }
 0x1b1   : > { %v852_v25 = vmul.f32 %v1458_v21, %v3121_v3  ;;  %v780_v40 = vadd.f32 %v778_v32, %v764_v29  ;;  %v2630_v46 = vadd.f32 %v1021_v39, %v2527_v56  ;;  %v2633_v51 = vadd.f32 %v1050_v58, %v2531_v59 }
 0x1b2   : > { %v865_v47 = vadd.f32 %v863_v26, %v861_v54  ;;  %v864_v13 = vadd.f32 %v2470_v55, %v858_v50  ;;  %v2637_v27 = vadd.f32 %v1079_v19, %v2535_v4  ;;  %v3123_v30 = vstv %s3117_s5 }
 0x1b3   : > { %v879_v48 = vmul.f32 %v3123_v30, %v779_v1  ;;  %v3124_v29 = vstv %s3119_s6  ;;  %v3125_v17 = vstv %s3035_s0  ;;  %v3126_v59 = vstv %s3120_s13 }
 0x1b4   : > { %v908_v56 = vmul.f32 %v3124_v29, %v779_v1  ;;  %v937_v8 = vmul.f32 %v3125_v17, %v779_v1  ;;  %v966_v62 = vmul.f32 %v3126_v59, %v779_v1  ;;  %v3127_v24 = vstv %s2143_s18  ;;  %s1354_s23 = sshll.u32 %s3128_s24, 7 }
 0x1b5   : > { %v995_v36 = vmul.f32 %v3127_v24, %v779_v1  ;;  %v3129_v55 = vstv %s3122_s29  ;;  %v867_v57 = vadd.f32 %v865_v47, %v851_v11  ;;  %v3130_v4 = vstv %s2147_s10  ;;  %s2703_s9 = scalar_lea.vmem [#allocation12], %s1354_s23 }
 0x1b6   : > { %v1024_v0 = vmul.f32 %v3129_v55, %v779_v1  ;;  %v1053_v52 = vmul.f32 %v3130_v4, %v779_v1  ;;  %v3131_v49 = vstv %s2150_s16  ;;  %v3132_v63 = vmov %v3123_v30 }
 0x1b7   : > { %v1082_v12 = vmul.f32 %v3131_v49, %v779_v1  ;;  %v880_v37 = vmul.f32 %v3132_v63, %v780_v40  ;;  %v866_v31 = vadd.f32 %v864_v13, %v862_v42  ;;  %v3133_v32 = vstv %s3037_s27 }
 0x1b8   : > { %v883_v15 = vmul.f32 %v3133_v32, %v867_v57  ;;  %v3134_v20 = vstv %s3039_s17  ;;  %v3135_v23 = vstv %s3041_s14  ;;  %v3136_v7 = vstv %s3043_s1 }
 0x1b9   : > { %v912_v14 = vmul.f32 %v3134_v20, %v867_v57  ;;  %v941_v22 = vmul.f32 %v3135_v23, %v867_v57  ;;  %v970_v16 = vmul.f32 %v3136_v7, %v867_v57  ;;  %v3137_v38 = vstv %s3045_s22 }
 0x1ba   : > { %v999_v54 = vmul.f32 %v3137_v38, %v867_v57  ;;  %v3138_v21 = vstv %s2283_s12  ;;  %v3139_v39 = vstv %s2295_s21  ;;  %v3140_v58 = vstv %s2309_s7 }
 0x1bb   : > { %v1028_v2 = vmul.f32 %v3138_v21, %v867_v57  ;;  %v1057_v44 = vmul.f32 %v3139_v39, %v867_v57  ;;  %v1086_v26 = vmul.f32 %v3140_v58, %v867_v57  ;;  %v887_v50 = vadd.f32 %v883_v15, %v879_v48 }
 0x1bc   : > { %v916_v18 = vadd.f32 %v912_v14, %v908_v56  ;;  %v945_v19 = vadd.f32 %v941_v22, %v937_v8  ;;  %v974_v1 = vadd.f32 %v970_v16, %v966_v62  ;;  %v1003_v10 = vadd.f32 %v999_v54, %v995_v36 }
 0x1bd   : > { %v1032_v11 = vadd.f32 %v1028_v2, %v1024_v0  ;;  %v1061_v42 = vadd.f32 %v1057_v44, %v1053_v52  ;;  %v1090_v3 = vadd.f32 %v1086_v26, %v1082_v12  ;;  %v889_v47 = vadd.f32 %v887_v50, %v2568_v33 }
 0x1be   : > { %v918_v13 = vadd.f32 %v916_v18, %v2570_v35  ;;  %v947_v30 = vadd.f32 %v945_v19, %v2575_v45  ;;  %v976_v48 = vadd.f32 %v974_v1, %v2577_v61  ;;  %v1005_v29 = vadd.f32 %v1003_v10, %v2582_v34 }
 0x1bf   : > { %v1034_v56 = vadd.f32 %v1032_v11, %v2584_v6  ;;  %v1063_v17 = vadd.f32 %v1061_v42, %v2586_v53  ;;  %v1092_v8 = vadd.f32 %v1090_v3, %v1088_v9  ;;  %v3146_v59 = vstv %s3141_s30 }
 0x1c0   : > { %v893_v62 = vadd.f32 %v3146_v59, %v889_v47  ;;  %v3147_v24 = vstv %s3142_s28  ;;  %v3148_v36 = vstv %s3143_s15  ;;  %v3149_v55 = vstv %s3044_s2 }
 0x1c1   : > { %v922_v33 = vadd.f32 %v3147_v24, %v918_v13  ;;  %v951_v35 = vadd.f32 %v3148_v36, %v947_v30  ;;  %v980_v45 = vadd.f32 %v3149_v55, %v976_v48  ;;  %v3150_v0 = vstv %s3046_s26 }
 0x1c2   : > { %v1009_v61 = vadd.f32 %v3150_v0, %v1005_v29  ;;  %v3151_v57 = vstv %s3144_s20  ;;  %v3152_v6 = vstv %s3145_s3  ;;  %v3153_v53 = vstv %s2315_s4  ;;  %896 = vst.msk [vmem:[%s2703_s9] sm:$0xff] %vm357_vm3, %v893_v62 }
 0x1c3   : > { %v1038_v34 = vadd.f32 %v3151_v57, %v1034_v56  ;;  %v1067_v4 = vadd.f32 %v3152_v6, %v1063_v17  ;;  %v1096_v9 = vadd.f32 %v3153_v53, %v1092_v8  ;;  %v3154_v52 = vstv %s3119_s6  ;;  %1468 = vst.msk [vmem:[%s2703_s9 + $0x10] sm:$0xff] %vm357_vm3, %v922_v33  ;;  %1475 = vst.msk [vmem:[%s2703_s9 + $0x20] sm:$0xff] %vm357_vm3, %v951_v35 }
 0x1c4   : > { %v909_v49 = vmul.f32 %v3154_v52, %v780_v40  ;;  %v3155_v12 = vstv %s3035_s0  ;;  %v3156_v32 = vstv %s3120_s13  ;;  %1482 = vst.msk [vmem:[%s2703_s9 + $0x30] sm:$0xff] %vm357_vm3, %v980_v45  ;;  %v868_v20 = vadd.f32 %v866_v31, %v852_v25  ;;  %1489 = vst.msk [vmem:[%s2703_s9 + $0x40] sm:$0xff] %vm357_vm3, %v1009_v61  ;;  %s3163_s0 = sld [smem:[#allocation20_spill]] }
 0x1c5   : > { %v938_v63 = vmul.f32 %v3155_v12, %v780_v40  ;;  %v967_v15 = vmul.f32 %v3156_v32, %v780_v40  ;;  %v3157_v14 = vstv %s2143_s18  ;;  %v3158_v22 = vstv %s3122_s29  ;;  %1496 = vst.msk [vmem:[%s2703_s9 + $0x50] sm:$0xff] %vm357_vm3, %v1038_v34  ;;  %1503 = vst.msk [vmem:[%s2703_s9 + $0x60] sm:$0xff] %vm357_vm3, %v1067_v4 }
 0x1c6   : > { %v996_v23 = vmul.f32 %v3157_v14, %v780_v40  ;;  %v1025_v7 = vmul.f32 %v3158_v22, %v780_v40  ;;  %v3159_v16 = vstv %s2147_s10  ;;  %v3160_v54 = vstv %s2150_s16  ;;  %1510 = vst.msk [vmem:[%s2703_s9 + $0x70] sm:$0xff] %vm357_vm3, %v1096_v9  ;;  %s1117_s16 = sshll.u32 %s2703_s9, 4  ;;  %s3174_s10 = sld [smem:[#allocation80_spill]]  ;;  %s2768_s16 = int_to_ptr.vmem [resolvable:$true] %s1117_s16 }
 0x1c7   : > { %v1054_v38 = vmul.f32 %v3159_v16, %v780_v40  ;;  %v1083_v21 = vmul.f32 %v3160_v54, %v780_v40  ;;  %v3161_v2 = vstv %s3037_s27  ;;  %v3162_v25 = vstv %s3039_s17  ;;  %s1693_s4 = scalar_lea.vmem %s2768_s16, 2048 }
 0x1c8   : > { %v884_v39 = vmul.f32 %v3161_v2, %v868_v20  ;;  %v913_v31 = vmul.f32 %v3162_v25, %v868_v20  ;;  %v3164_v44 = vstv %s3041_s14  ;;  %v3165_v26 = vstv %s3043_s1  ;;  %p1694_p3 = scmp.ne.s32.totalorder %s2768_s16, %s1693_s4 }
 0x1c9   : > { %v942_v58 = vmul.f32 %v3164_v44, %v868_v20  ;;  %v971_v50 = vmul.f32 %v3165_v26, %v868_v20  ;;  %v3166_v18 = vstv %s3045_s22  ;;  %v3167_v19 = vstv %s2283_s12 }
 0x1ca   : > { %v1000_v40 = vmul.f32 %v3166_v18, %v868_v20  ;;  %v1029_v1 = vmul.f32 %v3167_v19, %v868_v20  ;;  %v3168_v10 = vstv %s2295_s21  ;;  %v3169_v42 = vstv %s2309_s7  ;;  %s1518_s1 = sshll.u32 %s3163_s0, 11  ;;  %p1695_p11 = pnand %p1694_p3, %p1928_p12 }
 0x1cb   : > { %v1058_v11 = vmul.f32 %v3168_v10, %v868_v20  ;;  %v1087_v3 = vmul.f32 %v3169_v42, %v868_v20  ;;  %v888_v47 = vadd.f32 %v884_v39, %v880_v37  ;;  %v917_v13 = vadd.f32 %v913_v31, %v909_v49 }
 0x1cc   : > { %v946_v30 = vadd.f32 %v942_v58, %v938_v63  ;;  %v975_v48 = vadd.f32 %v971_v50, %v967_v15  ;;  %v1004_v29 = vadd.f32 %v1000_v40, %v996_v23  ;;  %v1033_v56 = vadd.f32 %v1029_v1, %v1025_v7  ;;  %s2766_s14 = scalar_lea.hbm %s3174_s10, %s1518_s1  ;;  %p1696_p6 = pneg %p1695_p11 }
 0x1cd   : > { %v1062_v17 = vadd.f32 %v1058_v11, %v1054_v38  ;;  %v1091_v8 = vadd.f32 %v1087_v3, %v1083_v21  ;;  %v890_v59 = vadd.f32 %v888_v47, %v2612_v5  ;;  %v919_v37 = vadd.f32 %v917_v13, %v2615_v28 }
 0x1ce   : > { %v948_v62 = vadd.f32 %v946_v30, %v2621_v43  ;;  %v977_v24 = vadd.f32 %v975_v48, %v2624_v41  ;;  %v1006_v33 = vadd.f32 %v1004_v29, %v2627_v60  ;;  %v1035_v36 = vadd.f32 %v1033_v56, %v2630_v46 }
 0x1cf   : > { %v1064_v35 = vadd.f32 %v1062_v17, %v2633_v51  ;;  %v1093_v5 = vadd.f32 %v1091_v8, %v2637_v27  ;;  %v3170_v55 = vstv %s3141_s30  ;;  %v3171_v45 = vstv %s3142_s28 }
 0x1d0   : > { %v894_v28 = vadd.f32 %v3170_v55, %v890_v59  ;;  %v923_v43 = vadd.f32 %v3171_v45, %v919_v37  ;;  %v3172_v0 = vstv %s3143_s15  ;;  %v3173_v61 = vstv %s3044_s2  ;;  %s1102_s2 = scalar_lea.sflag [#allocation6], %s3128_s24 }
 0x1d1   : > { %v952_v41 = vadd.f32 %v3172_v0, %v948_v62  ;;  %v981_v60 = vadd.f32 %v3173_v61, %v977_v24  ;;  %v3175_v46 = vstv %s3046_s26  ;;  %v3177_v27 = vmov %v3151_v57  ;;  %s1793_s26 = smov [#allocation12]  }
 0x1d2   : > { %v1010_v51 = vadd.f32 %v3175_v46, %v1006_v33  ;;  %v1039_v57 = vadd.f32 %v3177_v27, %v1035_v36  ;;  %v3178_v34 = vmov %v3152_v6  ;;  %v3179_v4 = vmov %v3153_v53  ;;  %897 = vst.msk [vmem:[%s2703_s9 + $0x8] sm:$0xff] %vm357_vm3, %v894_v28  ;;  %1469 = vst.msk [vmem:[%s2703_s9 + $0x18] sm:$0xff] %vm357_vm3, %v923_v43  ;;  %s1697_s21 = sshll.u32 %s1793_s26, 4  ;;  %s1698_s21 = int_to_ptr.vmem [resolvable:$false] %s1697_s21 }
 0x1d3   : > { %v1068_v6 = vadd.f32 %v3178_v34, %v1064_v35  ;;  %v1097_v53 = vadd.f32 %v3179_v4, %v1093_v5  ;;  %1476 = vst.msk [vmem:[%s2703_s9 + $0x28] sm:$0xff] %vm357_vm3, %v952_v41  ;;  %1483 = vst.msk [vmem:[%s2703_s9 + $0x38] sm:$0xff] %vm357_vm3, %v981_v60  ;;  %s1699_s7 = scalar_lea.vmem %s1698_s21, 4096  ;;  %p1700_p1 = scmp.lt.s32.totalorder %s2768_s16, %s1698_s21 }
 0x1d4   : > { %1490 = vst.msk [vmem:[%s2703_s9 + $0x48] sm:$0xff] %vm357_vm3, %v1010_v51  ;;  %1497 = vst.msk [vmem:[%s2703_s9 + $0x58] sm:$0xff] %vm357_vm3, %v1039_v57  ;;  %p1701_p5 = scmp.lt.s32.totalorder %s1699_s7, %s1693_s4 }
 0x1d5   : > { %1504 = vst.msk [vmem:[%s2703_s9 + $0x68] sm:$0xff] %vm357_vm3, %v1068_v6  ;;  %1511 = vst.msk [vmem:[%s2703_s9 + $0x78] sm:$0xff] %vm357_vm3, %v1097_v53 }
 0x1d6   : > { %p1702_p2 = por %p1701_p5, %p1700_p1 }
 0x1d8   : > { %p1703_p4 = pnand %p1702_p2, %p1696_p6 }
 0x1da   : > { %1706 = shalt.err (!%p1703_p4)
}
 0x1db   : > { %s1707_s12 = scalar_lea.hbm %s2766_s14, 2048  ;;  %s1711_s11 = scalar_lea.hbm %s3174_s10, 4096 }
 0x1dc   : > { %p1708_p8 = scmp.ne.s32.totalorder %s2766_s14, %s1707_s12  ;;  %p1712_p10 = scmp.lt.s32.totalorder %s2766_s14, %s3174_s10 }
 0x1dd   : > { %p1713_p0 = scmp.lt.s32.totalorder %s1711_s11, %s1707_s12 }
 0x1de   : > { %p1709_p13 = pnand %p1708_p8, %p1928_p12 }
 0x1df   : > { %p1714_p9 = por %p1713_p0, %p1712_p10 }
 0x1e0   : > { %p1710_p7 = pneg %p1709_p13 }
 0x1e2   : > { %p1715_p3 = pnand %p1714_p9, %p1710_p7 }
 0x1e4   : > { %1718 = shalt.err (!%p1715_p3)
}
 0x1e5   : > { %s1794_s5 = smov 128   ;;  %s1795_s6 = smov 8  }
 0x1e6   : > { %1533 = dma.vmem_to_hbm [thread:$0]  (%p1928_p12), %s2768_s16, 2048, %s2766_s14, %s1102_s2, %s1794_s5, %s1794_s5, %s1795_s6  }
 0x1e7 PF: > { %s3180_s13 = sld [smem:[#allocation17_spill]] }
 0x1e8   : > { %s3181_s29 = sld [smem:[#allocation23_spill]] }
 0x1e9   : > { %s3182_s23 = sld [smem:[#allocation22_spill]] }
 0x1ed   : > { %s1132_s30 = sand.u32 1, %s3180_s13  }
 0x1ee   : > { %p3183_p11 = scmp.ne.s32.totalorder %s3181_s29, 0  ;;  %s1133_s28 = scalar_lea.sflag [#allocation6], %s1132_s30 }
 0x1ef   : > { %p3184_p6 = scmp.ge.s32.totalorder %s3182_s23, 2 }
 0x1f1   : > { %p1550_p1 = pnand %p3184_p6, %p3183_p11 }
 0x1f3   : > { %p1551_p5 = pneg %p1550_p1 }
 0x1f5   : > { %1756 = dma.done.wait (%p1551_p5), %s1133_s28, 2048  }
 0x1f6   : > { %1758 = vsyncadd (%p1551_p5), %s1133_s28, 4294965248  ;;  %s22_s20 = sadd.s32 1, %s3182_s23   ;;  %s3185_s15 = sld [smem:[#allocation18_spill]] }
 0x1f7   : > { %p19_p2 = scmp.ge.s32.totalorder %s22_s20, 4   ;;  %s3186_s16 = sld [smem:[#allocation19_spill]] }
 0x1f8   : > { %s3187_s17 = sld [smem:[#allocation26_spill]] }
 0x1f9   : > { %s3188_s18 = sld [smem:[#allocation21_spill]]  ;;  %21 = sbr.rel (!%p19_p2) target bundleno = 14 (0xe), region = 143 }
 0x1fa   : > { %s3189_s19 = sld [smem:[#allocation25_spill]] }
 0x1fe   :  { %1138 = vsyncpa [#allocation5], 1 }
 0x1ff   :  { %1140 = vsyncpa [#allocation5 + $0x1], 1 }
 0x200   :  { %1141 = vsyncpa [#allocation6], 1 }
 0x201   :  { %1143 = vsyncpa [#allocation6 + $0x1], 1 }
 0x202   :  { %1144 = vsyncpa [#allocation7], 1 }
 0x203   :  { %1146 = vsyncpa [#allocation7 + $0x1], 1 }
 0x204   :  { %1147 = vsyncpa [#allocation10], 1 }

</bundles_post_ra>
